<compile_context>
chip_gen: v6e
topology: v6e:2x2x1
jax: 0.10.0
libtpu: 0.0.40
codegen_flags: <defaults>
</compile_context>

<pallas_src>
import math
from functools import partial

import jax
import jax.numpy as jnp
from jax.experimental import pallas as pl
from jax.experimental.pallas import tpu as pltpu

BN_EPS = 1e-5


def _round_up(x, m):
    return ((x + m - 1) // m) * m


# --------------------------------------------------------------- fused tiled matmul
def _mm_fused_kernel(x_ref, w_ref, shift_ref, o_ref, acc_ref, *, act, neg_slope):
    """acc += x @ w over the K grid axis; epilogue (shift + act) at the last K step."""
    @pl.when(pl.program_id(2) == 0)
    def _():
        acc_ref[...] = jnp.zeros_like(acc_ref)

    acc_ref[...] += jnp.dot(x_ref[...], w_ref[...],
                            preferred_element_type=jnp.float32)

    @pl.when(pl.program_id(2) == pl.num_programs(2) - 1)
    def _():
        y = acc_ref[...] + shift_ref[...]
        if act == "lrelu":
            y = jnp.where(y >= 0.0, y, neg_slope * y)
        elif act == "softmax":
            m = jnp.max(y, axis=-1, keepdims=True)
            e = jnp.exp(y - m)
            y = e * pl.reciprocal(jnp.sum(e, axis=-1, keepdims=True), approx=True)
        o_ref[...] = y.astype(o_ref.dtype)


def matmul_fused(x, w, shift, *, act="none", neg_slope=0.01,
                 tm=128, tn=128, tk=256, out_dtype=jnp.float32):
    """y = act((x @ w) + shift). MXU operands are cast to bf16, accumulation is f32.
    BN scale is expected to already be folded into `w` by the caller."""
    M, K = x.shape
    Kw, N = w.shape
    assert K == Kw
    # Clamp tiles to the (128-rounded) problem size to avoid gratuitous padding.
    tm = min(tm, _round_up(M, 128))
    tn = min(tn, _round_up(N, 128))
    tk = min(tk, _round_up(K, 128))
    Mp, Kp, Np = _round_up(M, tm), _round_up(K, tk), _round_up(N, tn)
    if act == "softmax":
        # softmax epilogue normalizes over one output tile -> need all classes in one tile
        assert Np == tn, "softmax needs the whole class row inside a single N tile"

    xp = jnp.pad(x.astype(jnp.bfloat16), ((0, Mp - M), (0, Kp - K)))
    wp = jnp.pad(w.astype(jnp.bfloat16), ((0, Kp - K), (0, Np - N)))
    pad_val = -1e30 if act == "softmax" else 0.0  # padded logits -> exp() underflows to 0
    sp = jnp.pad(shift.astype(jnp.float32).reshape(1, N),
                 ((0, 0), (0, Np - N)), constant_values=pad_val)

    grid = (Mp // tm, Np // tn, Kp // tk)
    out = pl.pallas_call(
        partial(_mm_fused_kernel, act=act, neg_slope=neg_slope),
        out_shape=jax.ShapeDtypeStruct((Mp, Np), out_dtype),
        grid_spec=pltpu.PrefetchScalarGridSpec(
            num_scalar_prefetch=0,
            grid=grid,
            in_specs=[
                pl.BlockSpec((tm, tk), lambda i, j, k: (i, k)),
                pl.BlockSpec((tk, tn), lambda i, j, k: (k, j)),
                pl.BlockSpec((1, tn), lambda i, j, k: (0, j)),
            ],
            out_specs=pl.BlockSpec((tm, tn), lambda i, j, k: (i, j)),
            scratch_shapes=[pltpu.VMEM((tm, tn), jnp.float32)],
        ),
        compiler_params=pltpu.CompilerParams(
            dimension_semantics=("parallel", "parallel", "arbitrary")),
    )(xp, wp, sp)
    return out[:M, :N]


# ------------------------------------------------------------- streaming BiLSTM kernel
def _sigmoid(z):
    return 1.0 / (1.0 + jnp.exp(-z))


def _bilstm_step_kernel(gxf_ref, gxb_ref, w_ref, of_ref, ob_ref,
                        h_sc, cf_sc, cb_sc, *, H):
    """One time step per grid iteration. gxf_ref/gxb_ref are (1, N, 4H) views of the
    same (T, N, 8H) gate-projection tensor: forward columns at time t, backward columns
    at time T-1-t. w_ref is the block-diagonal [[Whh_f^T, 0], [0, Whh_b^T]] of shape
    (2H, 8H) in bf16, so BOTH directions use a single MXU push per step.
    PyTorch gate order: i, f, g, o."""
    t = pl.program_id(0)

    @pl.when(t == 0)
    def _():
        h_sc[...] = jnp.zeros_like(h_sc)
        cf_sc[...] = jnp.zeros_like(cf_sc)
        cb_sc[...] = jnp.zeros_like(cb_sc)

    gates_h = jnp.dot(h_sc[...].astype(jnp.bfloat16), w_ref[...],
                      preferred_element_type=jnp.float32)          # (N, 8H)
    gf = gxf_ref[0] + gates_h[:, :4 * H]
    gb = gxb_ref[0] + gates_h[:, 4 * H:]

    def cell(g, c_prev):
        i = _sigmoid(g[:, 0 * H:1 * H])
        f = _sigmoid(g[:, 1 * H:2 * H])
        gg = jnp.tanh(g[:, 2 * H:3 * H])
        o = _sigmoid(g[:, 3 * H:4 * H])
        c = f * c_prev + i * gg
        h = o * jnp.tanh(c)
        return h, c

    hf, cf = cell(gf, cf_sc[...])
    hb, cb = cell(gb, cb_sc[...])
    cf_sc[...] = cf
    cb_sc[...] = cb
    h_sc[:, 0:H] = hf
    h_sc[:, H:2 * H] = hb
    of_ref[0] = hf
    ob_ref[0] = hb


def bilstm(gx, w_blk_bf16, *, H):
    """gx: (T, N_pad, 8H) f32 input projections ([fwd 4H | bwd 4H]); w_blk_bf16: (2H, 8H).
    Returns (T, N_pad, H) = h_fwd + h_bwd (directions summed)."""
    T, Np, G2 = gx.shape
    assert G2 == 8 * H
    assert (4 * H) % 128 == 0, "4*hidden must be a multiple of 128 lanes"
    assert Np % 8 == 0

    # TODO(synk): on v7x the two directions could additionally be split across the two
    # TensorCores (leading parallel grid axis of size 2 with per-core state).
    out_f, out_b = pl.pallas_call(
        partial(_bilstm_step_kernel, H=H),
        out_shape=(jax.ShapeDtypeStruct((T, Np, H), jnp.float32),
                   jax.ShapeDtypeStruct((T, Np, H), jnp.float32)),
        grid_spec=pltpu.PrefetchScalarGridSpec(
            num_scalar_prefetch=0,
            grid=(T,),
            in_specs=[
                pl.BlockSpec((1, Np, 4 * H), lambda t: (t, 0, 0)),          # fwd gates @ t
                pl.BlockSpec((1, Np, 4 * H), lambda t: (T - 1 - t, 0, 1)),  # bwd gates @ T-1-t
                pl.BlockSpec((2 * H, 8 * H), lambda t: (0, 0)),             # resident W_hh
            ],
            out_specs=[
                pl.BlockSpec((1, Np, H), lambda t: (t, 0, 0)),
                pl.BlockSpec((1, Np, H), lambda t: (T - 1 - t, 0, 0)),
            ],
            scratch_shapes=[
                pltpu.VMEM((Np, 2 * H), jnp.float32),   # [h_fwd | h_bwd]
                pltpu.VMEM((Np, H), jnp.float32),       # c_fwd
                pltpu.VMEM((Np, H), jnp.float32),       # c_bwd
            ],
        ),
        compiler_params=pltpu.CompilerParams(dimension_semantics=("arbitrary",)),
    )(gx, gx, w_blk_bf16)
    return out_f + out_b


# ----------------------------------------------------------------------------- glue
def im2col_tnc(h, K, stride):
    """h: (T_in, N, C) -> (T_out*N, C*K) with rows in (t, n) order and columns in
    (c, k) order (matches w.reshape(C_out, C_in*K))."""
    # TODO(synk): for stride==1 this could be expressed as K shifted matmuls accumulated
    # inside the fused kernel to avoid materializing the K-times-larger patch tensor.
    T_in, N, C = h.shape
    T_out = (T_in - K) // stride + 1
    idx = jnp.arange(T_out)[:, None] * stride + jnp.arange(K)[None, :]   # (T_out, K)
    patches = h[idx]                                                     # (T_out, K, N, C)
    patches = jnp.transpose(patches, (0, 2, 3, 1)).reshape(T_out * N, C * K)
    return patches, T_out


def init_params(key, *, nFreq, cmap, kernel_sz, cnn_layers, hidden, rnn_layers,
                num_classes):
    """Deterministic synthetic parameters matching the module's __init__ shapes."""
    def bn_params(k, n):
        k1, k2, k3, k4 = jax.random.split(k, 4)
        gamma = 1.0 + 0.1 * jax.random.normal(k1, (n,), jnp.float32)
        beta = 0.1 * jax.random.normal(k2, (n,), jnp.float32)
        rmean = 0.1 * jax.random.normal(k3, (n,), jnp.float32)
        rvar = jax.random.uniform(k4, (n,), jnp.float32, 0.5, 1.5)
        return (gamma, beta, rmean, rvar)

    keys = jax.random.split(key, 4)
    params = {}

    # conv stack: Conv1d + BatchNorm1d + LeakyReLU per layer
    conv = []
    c_in = nFreq
    for li in range(cnn_layers):
        k = jax.random.fold_in(keys[0], li)
        kw, kb, kbn = jax.random.split(k, 3)
        fan_in = c_in * kernel_sz
        w = jax.random.normal(kw, (cmap, c_in, kernel_sz), jnp.float32) / math.sqrt(fan_in)
        b = 0.1 * jax.random.normal(kb, (cmap,), jnp.float32)
        conv.append((w, b, bn_params(kbn, cmap)))
        c_in = cmap
    params["conv"] = conv

    # rnn stack: bidirectional LSTM, bias=False; layer 0 has no input BatchNorm
    rnns = []
    in_sz = cmap
    for li in range(rnn_layers):
        k = jax.random.fold_in(keys[1], li)
        k1, k2, k3, k4, k5 = jax.random.split(k, 5)
        sc = 1.0 / math.sqrt(hidden)
        wih_f = sc * jax.random.normal(k1, (4 * hidden, in_sz), jnp.float32)
        whh_f = sc * jax.random.normal(k2, (4 * hidden, hidden), jnp.float32)
        wih_b = sc * jax.random.normal(k3, (4 * hidden, in_sz), jnp.float32)
        whh_b = sc * jax.random.normal(k4, (4 * hidden, hidden), jnp.float32)
        bn = None if li == 0 else bn_params(k5, in_sz)
        rnns.append((wih_f, whh_f, wih_b, whh_b, bn))
        in_sz = hidden
    params["rnns"] = rnns

    # fc: BatchNorm1d(hidden) + Linear(hidden, num_classes, bias=False)
    kbn, kw = jax.random.split(keys[2])
    w_fc = jax.random.normal(kw, (num_classes, hidden), jnp.float32) / math.sqrt(hidden)
    params["fc"] = (bn_params(kbn, hidden), w_fc)
    return params


def deepspeech_ken_forward(x, params, *, kernel_sz, stride, cmap, hidden, num_classes,
                           nDownsample=1):
    if x.ndim == 4:
        x = jnp.squeeze(x)                      # mirrors x.squeeze() in the module
    N = x.shape[0]
    neg_slope = float(cmap)                     # nn.LeakyReLU(map) => negative_slope == map
    cnn_layers = len(params["conv"])
    strides = [stride] + [1 if nDownsample == 1 else stride] * (cnn_layers - 1)

    # Activations in (T, N, C) layout throughout; single small transpose of the raw input.
    h = jnp.transpose(x, (2, 0, 1)).astype(jnp.float32)          # (T, N, C)

    # ---- conv stack: Conv1d + eval-BN (scale folded into weights) + LeakyReLU ----
    for li, (w, b, (gamma, beta, rmean, rvar)) in enumerate(params["conv"]):
        patches, T_out = im2col_tnc(h, kernel_sz, strides[li])
        sbn = gamma / jnp.sqrt(rvar + BN_EPS)
        w_eff = w.reshape(w.shape[0], -1).T * sbn[None, :]       # (C_in*K, C_out) * BN scale
        shift = (b - rmean) * sbn + beta                         # conv bias folded into BN
        y = matmul_fused(patches, w_eff, shift, act="lrelu", neg_slope=neg_slope)
        h = y.reshape(T_out, N, w.shape[0])                      # directly (T, N, C_out)

    # pad batch to 8 sublanes for the RNN stack; sliced off at the end
    T_r, Nb, _ = h.shape
    N_pad = _round_up(max(Nb, 8), 8)
    if N_pad != Nb:
        h = jnp.pad(h, ((0, 0), (0, N_pad - Nb), (0, 0)))
    xr = h                                                        # (T, N_pad, C)

    # ---- BatchRNN stack (bidirectional bias-free LSTM, eval-BN folded into W_ih) ----
    for li, (wih_f, whh_f, wih_b, whh_b, bn) in enumerate(params["rnns"]):
        T_r, Np_, Cin = xr.shape
        flat = xr.reshape(T_r * Np_, Cin)
        if bn is None:
            w_cat = jnp.concatenate([wih_f.T, wih_b.T], axis=1)            # (Cin, 8H)
            shift_cat = jnp.zeros((8 * hidden,), jnp.float32)
        else:
            gamma, beta, rmean, rvar = bn
            sbn = gamma / jnp.sqrt(rvar + BN_EPS)
            tbn = beta - rmean * sbn
            w_cat = jnp.concatenate([sbn[:, None] * wih_f.T,
                                     sbn[:, None] * wih_b.T], axis=1)
            shift_cat = jnp.concatenate([tbn @ wih_f.T, tbn @ wih_b.T], axis=0)
        # both directions' input projections in one lane-dense (8H-wide) matmul
        gx = matmul_fused(flat, w_cat, shift_cat).reshape(T_r, Np_, 8 * hidden)

        # block-diagonal recurrent weight -> single MXU push for both directions per step
        w_blk = jnp.zeros((2 * hidden, 8 * hidden), jnp.float32)
        w_blk = w_blk.at[:hidden, :4 * hidden].set(whh_f.T)
        w_blk = w_blk.at[hidden:, 4 * hidden:].set(whh_b.T)
        xr = bilstm(gx, w_blk.astype(jnp.bfloat16), H=hidden)     # (T, N_pad, H)

    # ---- fc head: BN(H) + Linear(H -> classes, no bias) + softmax (eval), fused ----
    (gamma, beta, rmean, rvar), w_fc = params["fc"]
    sbn = gamma / jnp.sqrt(rvar + BN_EPS)
    tbn = beta - rmean * sbn
    w_eff = sbn[:, None] * w_fc.T                                 # (H, classes)
    shift = tbn @ w_fc.T
    T_r, Np_, Hh = xr.shape
    probs = matmul_fused(xr.reshape(T_r * Np_, Hh), w_eff, shift, act="softmax")
    probs = probs.reshape(T_r, Np_, num_classes)[:, :N, :]
    # (T, N, C) -> (N, T, C); softmax over the last dim commutes with the transpose
    return jnp.transpose(probs, (1, 0, 2))


# ------------------------------------------------------------------------------- main
if __name__ == "__main__":
    # small shapes consistent with the module's forward
    N, nFreq, T = 2, 16, 64
    cmap, kernel_sz, stride, cnn_layers = 32, 5, 2, 2
    hidden, rnn_layers = 32, 2
    labels = "abcde"
    num_classes = len(labels)

    key = jax.random.PRNGKey(0)
    kx, kp = jax.random.split(key)
    x = jax.random.normal(kx, (N, nFreq, T), jnp.float32)
    params = init_params(kp, nFreq=nFreq, cmap=cmap, kernel_sz=kernel_sz,
                         cnn_layers=cnn_layers, hidden=hidden,
                         rnn_layers=rnn_layers, num_classes=num_classes)

    fwd = jax.jit(partial(deepspeech_ken_forward, kernel_sz=kernel_sz, stride=stride,
                          cmap=cmap, hidden=hidden, num_classes=num_classes))
    out = jax.block_until_ready(fwd(x, params))

    T1 = (T - kernel_sz) // stride + 1
    T2 = T1 - kernel_sz + 1
    assert out.shape == (N, T2, num_classes), out.shape
    assert bool(jnp.all(jnp.isfinite(out)))
    assert bool(jnp.allclose(out.sum(-1), 1.0, atol=5e-3))   # softmax rows sum to ~1
    print("KERNEL_OK")
</pallas_src>

<mosaic_0001>
module attributes {stable_mosaic.version = 11 : i64} {
  func.func @_mm_fused_kernel(%arg0: i32, %arg1: i32, %arg2: i32, %arg3: memref<128x128xbf16, #tpu.memory_space<vmem>>, %arg4: memref<128x128xbf16, #tpu.memory_space<vmem>>, %arg5: memref<1x128xf32, #tpu.memory_space<vmem>>, %arg6: memref<128x128xf32, #tpu.memory_space<vmem>>, %arg7: memref<128x128xf32, #tpu.memory_space<vmem>>) attributes {dimension_semantics = [#tpu.dimension_semantics<parallel>, #tpu.dimension_semantics<parallel>, #tpu.dimension_semantics<arbitrary>], iteration_bounds = array<i64: 1, 1, 1>, scalar_prefetch = 0 : i64, scratch_operands = 1 : i64, tpu.core_type = #tpu.core_type<tc>, window_params = [{transform_indices = @transform_0, window_bounds = array<i64: 128, 128>}, {transform_indices = @transform_1, window_bounds = array<i64: 128, 128>}, {transform_indices = @transform_2, window_bounds = array<i64: 1, 128>}, {transform_indices = @transform_3, window_bounds = array<i64: 128, 128>}]} {
    %c0_i32 = arith.constant 0 : i32
    %0 = arith.cmpi eq, %arg2, %c0_i32 : i32
    %1 = arith.extui %0 : i1 to i32
    %c0_i32_0 = arith.constant 0 : i32
    %2 = arith.cmpi ne, %1, %c0_i32_0 : i32
    scf.if %2 {
      %cst_10 = arith.constant 0.000000e+00 : f32
      %12 = vector.broadcast %cst_10 : f32 to vector<128x128xf32>
      %c0_11 = arith.constant 0 : index
      %c0_12 = arith.constant 0 : index
      %13 = vector.load %arg7[%c0_11, %c0_12] : memref<128x128xf32, #tpu.memory_space<vmem>>, vector<128x128xf32>
      tpu.vector_store %arg7[%c0_11, %c0_12], %12 {strides = array<i32>} : memref<128x128xf32, #tpu.memory_space<vmem>>, vector<128x128xf32>,
    } else {
    }
    %c0 = arith.constant 0 : index
    %c0_1 = arith.constant 0 : index
    %3 = vector.load %arg7[%c0, %c0_1] : memref<128x128xf32, #tpu.memory_space<vmem>>, vector<128x128xf32>
    %c0_2 = arith.constant 0 : index
    %c0_3 = arith.constant 0 : index
    %4 = vector.load %arg3[%c0_2, %c0_3] : memref<128x128xbf16, #tpu.memory_space<vmem>>, vector<128x128xbf16>
    %c0_4 = arith.constant 0 : index
    %c0_5 = arith.constant 0 : index
    %5 = vector.load %arg4[%c0_4, %c0_5] : memref<128x128xbf16, #tpu.memory_space<vmem>>, vector<128x128xbf16>
    %cst = arith.constant dense<0.000000e+00> : vector<128x128xf32>
    %6 = tpu.matmul %4, %5, %cst {dimension_numbers = #tpu.dot_dimension_numbers<[1], [0], [0], [1], [0, 0, 1, 1], [], []>} : vector<128x128xbf16>, vector<128x128xbf16>, vector<128x128xf32> -> vector<128x128xf32>
    %7 = arith.addf %3, %6 : vector<128x128xf32>
    %c0_6 = arith.constant 0 : index
    %c0_7 = arith.constant 0 : index
    %8 = vector.load %arg7[%c0_6, %c0_7] : memref<128x128xf32, #tpu.memory_space<vmem>>, vector<128x128xf32>
    tpu.vector_store %arg7[%c0_6, %c0_7], %7 {strides = array<i32>} : memref<128x128xf32, #tpu.memory_space<vmem>>, vector<128x128xf32>,
    %c0_i32_8 = arith.constant 0 : i32
    %9 = arith.cmpi eq, %arg2, %c0_i32_8 : i32
    %10 = arith.extui %9 : i1 to i32
    %c0_i32_9 = arith.constant 0 : i32
    %11 = arith.cmpi ne, %10, %c0_i32_9 : i32
    scf.if %11 {
      %c0_10 = arith.constant 0 : index
      %c0_11 = arith.constant 0 : index
      %12 = vector.load %arg7[%c0_10, %c0_11] : memref<128x128xf32, #tpu.memory_space<vmem>>, vector<128x128xf32>
      %c0_12 = arith.constant 0 : index
      %c0_13 = arith.constant 0 : index
      %13 = vector.load %arg5[%c0_12, %c0_13] : memref<1x128xf32, #tpu.memory_space<vmem>>, vector<1x128xf32>
      %14 = vector.broadcast %13 : vector<1x128xf32> to vector<128x128xf32>
      %15 = arith.addf %12, %14 : vector<128x128xf32>
      %cst_14 = arith.constant 0.000000e+00 : f32
      %16 = vector.broadcast %cst_14 : f32 to vector<128x128xf32>
      %17 = arith.cmpf oge, %15, %16 : vector<128x128xf32>
      %cst_15 = arith.constant 3.200000e+01 : f32
      %18 = vector.broadcast %cst_15 : f32 to vector<128x128xf32>
      %19 = arith.mulf %18, %15 : vector<128x128xf32>
      %20 = arith.select %17, %15, %19 : vector<128x128xi1>, vector<128x128xf32>
      %c0_16 = arith.constant 0 : index
      %c0_17 = arith.constant 0 : index
      %21 = vector.load %arg6[%c0_16, %c0_17] : memref<128x128xf32, #tpu.memory_space<vmem>>, vector<128x128xf32>
      tpu.vector_store %arg6[%c0_16, %c0_17], %20 {strides = array<i32>} : memref<128x128xf32, #tpu.memory_space<vmem>>, vector<128x128xf32>,
    } else {
    }
    return
  }
  func.func @transform_0(%arg0: i32, %arg1: i32, %arg2: i32) -> (i32, i32) {
    %c0_i32 = arith.constant 0 : i32
    return %arg0, %arg2 : i32, i32
  }
  func.func @transform_1(%arg0: i32, %arg1: i32, %arg2: i32) -> (i32, i32) {
    %c0_i32 = arith.constant 0 : i32
    return %arg2, %arg1 : i32, i32
  }
  func.func @transform_2(%arg0: i32, %arg1: i32, %arg2: i32) -> (i32, i32) {
    %c0_i32 = arith.constant 0 : i32
    %c0_i32_0 = arith.constant 0 : i32
    return %c0_i32, %arg1 : i32, i32
  }
  func.func @transform_3(%arg0: i32, %arg1: i32, %arg2: i32) -> (i32, i32) {
    %c0_i32 = arith.constant 0 : i32
    return %arg0, %arg1 : i32, i32
  }
}

module attributes {stable_mosaic.version = 11 : i64} {
  func.func @_mm_fused_kernel(%arg0: i32, %arg1: i32, %arg2: i32, %arg3: memref<128x256xbf16, #tpu.memory_space<vmem>>, %arg4: memref<256x128xbf16, #tpu.memory_space<vmem>>, %arg5: memref<1x128xf32, #tpu.memory_space<vmem>>, %arg6: memref<128x128xf32, #tpu.memory_space<vmem>>, %arg7: memref<128x128xf32, #tpu.memory_space<vmem>>) attributes {dimension_semantics = [#tpu.dimension_semantics<parallel>, #tpu.dimension_semantics<parallel>, #tpu.dimension_semantics<arbitrary>], iteration_bounds = array<i64: 1, 1, 1>, scalar_prefetch = 0 : i64, scratch_operands = 1 : i64, tpu.core_type = #tpu.core_type<tc>, window_params = [{transform_indices = @transform_0, window_bounds = array<i64: 128, 256>}, {transform_indices = @transform_1, window_bounds = array<i64: 256, 128>}, {transform_indices = @transform_2, window_bounds = array<i64: 1, 128>}, {transform_indices = @transform_3, window_bounds = array<i64: 128, 128>}]} {
    %c0_i32 = arith.constant 0 : i32
    %0 = arith.cmpi eq, %arg2, %c0_i32 : i32
    %1 = arith.extui %0 : i1 to i32
    %c0_i32_0 = arith.constant 0 : i32
    %2 = arith.cmpi ne, %1, %c0_i32_0 : i32
    scf.if %2 {
      %cst_10 = arith.constant 0.000000e+00 : f32
      %12 = vector.broadcast %cst_10 : f32 to vector<128x128xf32>
      %c0_11 = arith.constant 0 : index
      %c0_12 = arith.constant 0 : index
      %13 = vector.load %arg7[%c0_11, %c0_12] : memref<128x128xf32, #tpu.memory_space<vmem>>, vector<128x128xf32>
      tpu.vector_store %arg7[%c0_11, %c0_12], %12 {strides = array<i32>} : memref<128x128xf32, #tpu.memory_space<vmem>>, vector<128x128xf32>,
    } else {
    }
    %c0 = arith.constant 0 : index
    %c0_1 = arith.constant 0 : index
    %3 = vector.load %arg7[%c0, %c0_1] : memref<128x128xf32, #tpu.memory_space<vmem>>, vector<128x128xf32>
    %c0_2 = arith.constant 0 : index
    %c0_3 = arith.constant 0 : index
    %4 = vector.load %arg3[%c0_2, %c0_3] : memref<128x256xbf16, #tpu.memory_space<vmem>>, vector<128x256xbf16>
    %c0_4 = arith.constant 0 : index
    %c0_5 = arith.constant 0 : index
    %5 = vector.load %arg4[%c0_4, %c0_5] : memref<256x128xbf16, #tpu.memory_space<vmem>>, vector<256x128xbf16>
    %cst = arith.constant dense<0.000000e+00> : vector<128x128xf32>
    %6 = tpu.matmul %4, %5, %cst {dimension_numbers = #tpu.dot_dimension_numbers<[1], [0], [0], [1], [0, 0, 1, 1], [], []>} : vector<128x256xbf16>, vector<256x128xbf16>, vector<128x128xf32> -> vector<128x128xf32>
    %7 = arith.addf %3, %6 : vector<128x128xf32>
    %c0_6 = arith.constant 0 : index
    %c0_7 = arith.constant 0 : index
    %8 = vector.load %arg7[%c0_6, %c0_7] : memref<128x128xf32, #tpu.memory_space<vmem>>, vector<128x128xf32>
    tpu.vector_store %arg7[%c0_6, %c0_7], %7 {strides = array<i32>} : memref<128x128xf32, #tpu.memory_space<vmem>>, vector<128x128xf32>,
    %c0_i32_8 = arith.constant 0 : i32
    %9 = arith.cmpi eq, %arg2, %c0_i32_8 : i32
    %10 = arith.extui %9 : i1 to i32
    %c0_i32_9 = arith.constant 0 : i32
    %11 = arith.cmpi ne, %10, %c0_i32_9 : i32
    scf.if %11 {
      %c0_10 = arith.constant 0 : index
      %c0_11 = arith.constant 0 : index
      %12 = vector.load %arg7[%c0_10, %c0_11] : memref<128x128xf32, #tpu.memory_space<vmem>>, vector<128x128xf32>
      %c0_12 = arith.constant 0 : index
      %c0_13 = arith.constant 0 : index
      %13 = vector.load %arg5[%c0_12, %c0_13] : memref<1x128xf32, #tpu.memory_space<vmem>>, vector<1x128xf32>
      %14 = vector.broadcast %13 : vector<1x128xf32> to vector<128x128xf32>
      %15 = arith.addf %12, %14 : vector<128x128xf32>
      %cst_14 = arith.constant 0.000000e+00 : f32
      %16 = vector.broadcast %cst_14 : f32 to vector<128x128xf32>
      %17 = arith.cmpf oge, %15, %16 : vector<128x128xf32>
      %cst_15 = arith.constant 3.200000e+01 : f32
      %18 = vector.broadcast %cst_15 : f32 to vector<128x128xf32>
      %19 = arith.mulf %18, %15 : vector<128x128xf32>
      %20 = arith.select %17, %15, %19 : vector<128x128xi1>, vector<128x128xf32>
      %c0_16 = arith.constant 0 : index
      %c0_17 = arith.constant 0 : index
      %21 = vector.load %arg6[%c0_16, %c0_17] : memref<128x128xf32, #tpu.memory_space<vmem>>, vector<128x128xf32>
      tpu.vector_store %arg6[%c0_16, %c0_17], %20 {strides = array<i32>} : memref<128x128xf32, #tpu.memory_space<vmem>>, vector<128x128xf32>,
    } else {
    }
    return
  }
  func.func @transform_0(%arg0: i32, %arg1: i32, %arg2: i32) -> (i32, i32) {
    %c0_i32 = arith.constant 0 : i32
    return %arg0, %arg2 : i32, i32
  }
  func.func @transform_1(%arg0: i32, %arg1: i32, %arg2: i32) -> (i32, i32) {
    %c0_i32 = arith.constant 0 : i32
    return %arg2, %arg1 : i32, i32
  }
  func.func @transform_2(%arg0: i32, %arg1: i32, %arg2: i32) -> (i32, i32) {
    %c0_i32 = arith.constant 0 : i32
    %c0_i32_0 = arith.constant 0 : i32
    return %c0_i32, %arg1 : i32, i32
  }
  func.func @transform_3(%arg0: i32, %arg1: i32, %arg2: i32) -> (i32, i32) {
    %c0_i32 = arith.constant 0 : i32
    return %arg0, %arg1 : i32, i32
  }
}

module attributes {stable_mosaic.version = 11 : i64} {
  func.func @_mm_fused_kernel(%arg0: i32, %arg1: i32, %arg2: i32, %arg3: memref<128x128xbf16, #tpu.memory_space<vmem>>, %arg4: memref<128x128xbf16, #tpu.memory_space<vmem>>, %arg5: memref<1x128xf32, #tpu.memory_space<vmem>>, %arg6: memref<128x128xf32, #tpu.memory_space<vmem>>, %arg7: memref<128x128xf32, #tpu.memory_space<vmem>>) attributes {dimension_semantics = [#tpu.dimension_semantics<parallel>, #tpu.dimension_semantics<parallel>, #tpu.dimension_semantics<arbitrary>], iteration_bounds = array<i64: 2, 2, 1>, scalar_prefetch = 0 : i64, scratch_operands = 1 : i64, tpu.core_type = #tpu.core_type<tc>, window_params = [{transform_indices = @transform_0, window_bounds = array<i64: 128, 128>}, {transform_indices = @transform_1, window_bounds = array<i64: 128, 128>}, {transform_indices = @transform_2, window_bounds = array<i64: 1, 128>}, {transform_indices = @transform_3, window_bounds = array<i64: 128, 128>}]} {
    %c0_i32 = arith.constant 0 : i32
    %0 = arith.cmpi eq, %arg2, %c0_i32 : i32
    %1 = arith.extui %0 : i1 to i32
    %c0_i32_0 = arith.constant 0 : i32
    %2 = arith.cmpi ne, %1, %c0_i32_0 : i32
    scf.if %2 {
      %cst_10 = arith.constant 0.000000e+00 : f32
      %12 = vector.broadcast %cst_10 : f32 to vector<128x128xf32>
      %c0_11 = arith.constant 0 : index
      %c0_12 = arith.constant 0 : index
      %13 = vector.load %arg7[%c0_11, %c0_12] : memref<128x128xf32, #tpu.memory_space<vmem>>, vector<128x128xf32>
      tpu.vector_store %arg7[%c0_11, %c0_12], %12 {strides = array<i32>} : memref<128x128xf32, #tpu.memory_space<vmem>>, vector<128x128xf32>,
    } else {
    }
    %c0 = arith.constant 0 : index
    %c0_1 = arith.constant 0 : index
    %3 = vector.load %arg7[%c0, %c0_1] : memref<128x128xf32, #tpu.memory_space<vmem>>, vector<128x128xf32>
    %c0_2 = arith.constant 0 : index
    %c0_3 = arith.constant 0 : index
    %4 = vector.load %arg3[%c0_2, %c0_3] : memref<128x128xbf16, #tpu.memory_space<vmem>>, vector<128x128xbf16>
    %c0_4 = arith.constant 0 : index
    %c0_5 = arith.constant 0 : index
    %5 = vector.load %arg4[%c0_4, %c0_5] : memref<128x128xbf16, #tpu.memory_space<vmem>>, vector<128x128xbf16>
    %cst = arith.constant dense<0.000000e+00> : vector<128x128xf32>
    %6 = tpu.matmul %4, %5, %cst {dimension_numbers = #tpu.dot_dimension_numbers<[1], [0], [0], [1], [0, 0, 1, 1], [], []>} : vector<128x128xbf16>, vector<128x128xbf16>, vector<128x128xf32> -> vector<128x128xf32>
    %7 = arith.addf %3, %6 : vector<128x128xf32>
    %c0_6 = arith.constant 0 : index
    %c0_7 = arith.constant 0 : index
    %8 = vector.load %arg7[%c0_6, %c0_7] : memref<128x128xf32, #tpu.memory_space<vmem>>, vector<128x128xf32>
    tpu.vector_store %arg7[%c0_6, %c0_7], %7 {strides = array<i32>} : memref<128x128xf32, #tpu.memory_space<vmem>>, vector<128x128xf32>,
    %c0_i32_8 = arith.constant 0 : i32
    %9 = arith.cmpi eq, %arg2, %c0_i32_8 : i32
    %10 = arith.extui %9 : i1 to i32
    %c0_i32_9 = arith.constant 0 : i32
    %11 = arith.cmpi ne, %10, %c0_i32_9 : i32
    scf.if %11 {
      %c0_10 = arith.constant 0 : index
      %c0_11 = arith.constant 0 : index
      %12 = vector.load %arg7[%c0_10, %c0_11] : memref<128x128xf32, #tpu.memory_space<vmem>>, vector<128x128xf32>
      %c0_12 = arith.constant 0 : index
      %c0_13 = arith.constant 0 : index
      %13 = vector.load %arg5[%c0_12, %c0_13] : memref<1x128xf32, #tpu.memory_space<vmem>>, vector<1x128xf32>
      %14 = vector.broadcast %13 : vector<1x128xf32> to vector<128x128xf32>
      %15 = arith.addf %12, %14 : vector<128x128xf32>
      %c0_14 = arith.constant 0 : index
      %c0_15 = arith.constant 0 : index
      %16 = vector.load %arg6[%c0_14, %c0_15] : memref<128x128xf32, #tpu.memory_space<vmem>>, vector<128x128xf32>
      tpu.vector_store %arg6[%c0_14, %c0_15], %15 {strides = array<i32>} : memref<128x128xf32, #tpu.memory_space<vmem>>, vector<128x128xf32>,
    } else {
    }
    return
  }
  func.func @transform_0(%arg0: i32, %arg1: i32, %arg2: i32) -> (i32, i32) {
    %c0_i32 = arith.constant 0 : i32
    return %arg0, %arg2 : i32, i32
  }
  func.func @transform_1(%arg0: i32, %arg1: i32, %arg2: i32) -> (i32, i32) {
    %c0_i32 = arith.constant 0 : i32
    return %arg2, %arg1 : i32, i32
  }
  func.func @transform_2(%arg0: i32, %arg1: i32, %arg2: i32) -> (i32, i32) {
    %c0_i32 = arith.constant 0 : i32
    %c0_i32_0 = arith.constant 0 : i32
    return %c0_i32, %arg1 : i32, i32
  }
  func.func @transform_3(%arg0: i32, %arg1: i32, %arg2: i32) -> (i32, i32) {
    %c0_i32 = arith.constant 0 : i32
    return %arg0, %arg1 : i32, i32
  }
}

module attributes {stable_mosaic.version = 11 : i64} {
  func.func @_bilstm_step_kernel(%arg0: i32, %arg1: memref<1x8x128xf32, #tpu.memory_space<vmem>>, %arg2: memref<1x8x128xf32, #tpu.memory_space<vmem>>, %arg3: memref<64x256xbf16, #tpu.memory_space<vmem>>, %arg4: memref<1x8x32xf32, #tpu.memory_space<vmem>>, %arg5: memref<1x8x32xf32, #tpu.memory_space<vmem>>, %arg6: memref<8x64xf32, #tpu.memory_space<vmem>>, %arg7: memref<8x32xf32, #tpu.memory_space<vmem>>, %arg8: memref<8x32xf32, #tpu.memory_space<vmem>>) attributes {dimension_semantics = [#tpu.dimension_semantics<arbitrary>], iteration_bounds = array<i64: 26>, scalar_prefetch = 0 : i64, scratch_operands = 3 : i64, tpu.core_type = #tpu.core_type<tc>, window_params = [{transform_indices = @transform_0, window_bounds = array<i64: 1, 8, 128>}, {transform_indices = @transform_1, window_bounds = array<i64: 1, 8, 128>}, {pipeline_mode = #tpu.pipeline_mode<synchronous>, transform_indices = @transform_2, window_bounds = array<i64: 64, 256>}, {transform_indices = @transform_3, window_bounds = array<i64: 1, 8, 32>}, {transform_indices = @transform_4, window_bounds = array<i64: 1, 8, 32>}]} {
    %c0_i32 = arith.constant 0 : i32
    %0 = arith.cmpi eq, %arg0, %c0_i32 : i32
    %1 = arith.extui %0 : i1 to i32
    %c0_i32_0 = arith.constant 0 : i32
    %2 = arith.cmpi ne, %1, %c0_i32_0 : i32
    scf.if %2 {
      %cst_45 = arith.constant 0.000000e+00 : f32
      %89 = vector.broadcast %cst_45 : f32 to vector<8x64xf32>
      %c0_46 = arith.constant 0 : index
      %c0_47 = arith.constant 0 : index
      %90 = vector.load %arg6[%c0_46, %c0_47] : memref<8x64xf32, #tpu.memory_space<vmem>>, vector<8x64xf32>
      tpu.vector_store %arg6[%c0_46, %c0_47], %89 {strides = array<i32>} : memref<8x64xf32, #tpu.memory_space<vmem>>, vector<8x64xf32>,
      %cst_48 = arith.constant 0.000000e+00 : f32
      %91 = vector.broadcast %cst_48 : f32 to vector<8x32xf32>
      %c0_49 = arith.constant 0 : index
      %c0_50 = arith.constant 0 : index
      %92 = vector.load %arg7[%c0_49, %c0_50] : memref<8x32xf32, #tpu.memory_space<vmem>>, vector<8x32xf32>
      tpu.vector_store %arg7[%c0_49, %c0_50], %91 {strides = array<i32>} : memref<8x32xf32, #tpu.memory_space<vmem>>, vector<8x32xf32>,
      %cst_51 = arith.constant 0.000000e+00 : f32
      %93 = vector.broadcast %cst_51 : f32 to vector<8x32xf32>
      %c0_52 = arith.constant 0 : index
      %c0_53 = arith.constant 0 : index
      %94 = vector.load %arg8[%c0_52, %c0_53] : memref<8x32xf32, #tpu.memory_space<vmem>>, vector<8x32xf32>
      tpu.vector_store %arg8[%c0_52, %c0_53], %93 {strides = array<i32>} : memref<8x32xf32, #tpu.memory_space<vmem>>, vector<8x32xf32>,
    } else {
    }
    %c0 = arith.constant 0 : index
    %c0_1 = arith.constant 0 : index
    %3 = vector.load %arg6[%c0, %c0_1] : memref<8x64xf32, #tpu.memory_space<vmem>>, vector<8x64xf32>
    %4 = arith.truncf %3 : vector<8x64xf32> to vector<8x64xbf16>
    %c0_2 = arith.constant 0 : index
    %c0_3 = arith.constant 0 : index
    %5 = vector.load %arg3[%c0_2, %c0_3] : memref<64x256xbf16, #tpu.memory_space<vmem>>, vector<64x256xbf16>
    %cst = arith.constant dense<0.000000e+00> : vector<8x256xf32>
    %6 = tpu.matmul %4, %5, %cst {dimension_numbers = #tpu.dot_dimension_numbers<[1], [0], [0], [1], [0, 0, 1, 1], [], []>} : vector<8x64xbf16>, vector<64x256xbf16>, vector<8x256xf32> -> vector<8x256xf32>
    %c0_4 = arith.constant 0 : index
    %c0_5 = arith.constant 0 : index
    %c0_6 = arith.constant 0 : index
    %7 = vector.load %arg1[%c0_4, %c0_5, %c0_6] : memref<1x8x128xf32, #tpu.memory_space<vmem>>, vector<1x8x128xf32>
    %8 = vector.shape_cast %7 : vector<1x8x128xf32> to vector<8x128xf32>
    %9 = vector.extract_strided_slice %6 {offsets = [0, 0], sizes = [8, 128], strides = [1, 1]} : vector<8x256xf32> to vector<8x128xf32>
    %10 = arith.addf %8, %9 : vector<8x128xf32>
    %c0_7 = arith.constant 0 : index
    %c0_8 = arith.constant 0 : index
    %c0_9 = arith.constant 0 : index
    %11 = vector.load %arg2[%c0_7, %c0_8, %c0_9] : memref<1x8x128xf32, #tpu.memory_space<vmem>>, vector<1x8x128xf32>
    %12 = vector.shape_cast %11 : vector<1x8x128xf32> to vector<8x128xf32>
    %13 = vector.extract_strided_slice %6 {offsets = [0, 128], sizes = [8, 128], strides = [1, 1]} : vector<8x256xf32> to vector<8x128xf32>
    %14 = arith.addf %12, %13 : vector<8x128xf32>
    %c0_10 = arith.constant 0 : index
    %c0_11 = arith.constant 0 : index
    %15 = vector.load %arg7[%c0_10, %c0_11] : memref<8x32xf32, #tpu.memory_space<vmem>>, vector<8x32xf32>
    %16 = vector.extract_strided_slice %10 {offsets = [0, 0], sizes = [8, 32], strides = [1, 1]} : vector<8x128xf32> to vector<8x32xf32>
    %cst_12 = arith.constant 0.000000e+00 : f32
    %17 = vector.broadcast %cst_12 : f32 to vector<8x32xf32>
    %18 = arith.subf %17, %16 : vector<8x32xf32>
    %19 = math.exp %18 : vector<8x32xf32>
    %cst_13 = arith.constant 1.000000e+00 : f32
    %20 = vector.broadcast %cst_13 : f32 to vector<8x32xf32>
    %21 = arith.addf %20, %19 : vector<8x32xf32>
    %cst_14 = arith.constant 1.000000e+00 : f32
    %22 = vector.broadcast %cst_14 : f32 to vector<8x32xf32>
    %23 = arith.divf %22, %21 : vector<8x32xf32>
    %24 = vector.extract_strided_slice %10 {offsets = [0, 32], sizes = [8, 32], strides = [1, 1]} : vector<8x128xf32> to vector<8x32xf32>
    %cst_15 = arith.constant 0.000000e+00 : f32
    %25 = vector.broadcast %cst_15 : f32 to vector<8x32xf32>
    %26 = arith.subf %25, %24 : vector<8x32xf32>
    %27 = math.exp %26 : vector<8x32xf32>
    %cst_16 = arith.constant 1.000000e+00 : f32
    %28 = vector.broadcast %cst_16 : f32 to vector<8x32xf32>
    %29 = arith.addf %28, %27 : vector<8x32xf32>
    %cst_17 = arith.constant 1.000000e+00 : f32
    %30 = vector.broadcast %cst_17 : f32 to vector<8x32xf32>
    %31 = arith.divf %30, %29 : vector<8x32xf32>
    %32 = vector.extract_strided_slice %10 {offsets = [0, 64], sizes = [8, 32], strides = [1, 1]} : vector<8x128xf32> to vector<8x32xf32>
    %33 = math.tanh %32 : vector<8x32xf32>
    %34 = vector.extract_strided_slice %10 {offsets = [0, 96], sizes = [8, 32], strides = [1, 1]} : vector<8x128xf32> to vector<8x32xf32>
    %cst_18 = arith.constant 0.000000e+00 : f32
    %35 = vector.broadcast %cst_18 : f32 to vector<8x32xf32>
    %36 = arith.subf %35, %34 : vector<8x32xf32>
    %37 = math.exp %36 : vector<8x32xf32>
    %cst_19 = arith.constant 1.000000e+00 : f32
    %38 = vector.broadcast %cst_19 : f32 to vector<8x32xf32>
    %39 = arith.addf %38, %37 : vector<8x32xf32>
    %cst_20 = arith.constant 1.000000e+00 : f32
    %40 = vector.broadcast %cst_20 : f32 to vector<8x32xf32>
    %41 = arith.divf %40, %39 : vector<8x32xf32>
    %42 = arith.mulf %31, %15 : vector<8x32xf32>
    %43 = arith.mulf %23, %33 : vector<8x32xf32>
    %44 = arith.addf %42, %43 : vector<8x32xf32>
    %45 = math.tanh %44 : vector<8x32xf32>
    %46 = arith.mulf %41, %45 : vector<8x32xf32>
    %c0_21 = arith.constant 0 : index
    %c0_22 = arith.constant 0 : index
    %47 = vector.load %arg8[%c0_21, %c0_22] : memref<8x32xf32, #tpu.memory_space<vmem>>, vector<8x32xf32>
    %48 = vector.extract_strided_slice %14 {offsets = [0, 0], sizes = [8, 32], strides = [1, 1]} : vector<8x128xf32> to vector<8x32xf32>
    %cst_23 = arith.constant 0.000000e+00 : f32
    %49 = vector.broadcast %cst_23 : f32 to vector<8x32xf32>
    %50 = arith.subf %49, %48 : vector<8x32xf32>
    %51 = math.exp %50 : vector<8x32xf32>
    %cst_24 = arith.constant 1.000000e+00 : f32
    %52 = vector.broadcast %cst_24 : f32 to vector<8x32xf32>
    %53 = arith.addf %52, %51 : vector<8x32xf32>
    %cst_25 = arith.constant 1.000000e+00 : f32
    %54 = vector.broadcast %cst_25 : f32 to vector<8x32xf32>
    %55 = arith.divf %54, %53 : vector<8x32xf32>
    %56 = vector.extract_strided_slice %14 {offsets = [0, 32], sizes = [8, 32], strides = [1, 1]} : vector<8x128xf32> to vector<8x32xf32>
    %cst_26 = arith.constant 0.000000e+00 : f32
    %57 = vector.broadcast %cst_26 : f32 to vector<8x32xf32>
    %58 = arith.subf %57, %56 : vector<8x32xf32>
    %59 = math.exp %58 : vector<8x32xf32>
    %cst_27 = arith.constant 1.000000e+00 : f32
    %60 = vector.broadcast %cst_27 : f32 to vector<8x32xf32>
    %61 = arith.addf %60, %59 : vector<8x32xf32>
    %cst_28 = arith.constant 1.000000e+00 : f32
    %62 = vector.broadcast %cst_28 : f32 to vector<8x32xf32>
    %63 = arith.divf %62, %61 : vector<8x32xf32>
    %64 = vector.extract_strided_slice %14 {offsets = [0, 64], sizes = [8, 32], strides = [1, 1]} : vector<8x128xf32> to vector<8x32xf32>
    %65 = math.tanh %64 : vector<8x32xf32>
    %66 = vector.extract_strided_slice %14 {offsets = [0, 96], sizes = [8, 32], strides = [1, 1]} : vector<8x128xf32> to vector<8x32xf32>
    %cst_29 = arith.constant 0.000000e+00 : f32
    %67 = vector.broadcast %cst_29 : f32 to vector<8x32xf32>
    %68 = arith.subf %67, %66 : vector<8x32xf32>
    %69 = math.exp %68 : vector<8x32xf32>
    %cst_30 = arith.constant 1.000000e+00 : f32
    %70 = vector.broadcast %cst_30 : f32 to vector<8x32xf32>
    %71 = arith.addf %70, %69 : vector<8x32xf32>
    %cst_31 = arith.constant 1.000000e+00 : f32
    %72 = vector.broadcast %cst_31 : f32 to vector<8x32xf32>
    %73 = arith.divf %72, %71 : vector<8x32xf32>
    %74 = arith.mulf %63, %47 : vector<8x32xf32>
    %75 = arith.mulf %55, %65 : vector<8x32xf32>
    %76 = arith.addf %74, %75 : vector<8x32xf32>
    %77 = math.tanh %76 : vector<8x32xf32>
    %78 = arith.mulf %73, %77 : vector<8x32xf32>
    %c0_32 = arith.constant 0 : index
    %c0_33 = arith.constant 0 : index
    %79 = vector.load %arg7[%c0_32, %c0_33] : memref<8x32xf32, #tpu.memory_space<vmem>>, vector<8x32xf32>
    tpu.vector_store %arg7[%c0_32, %c0_33], %44 {strides = array<i32>} : memref<8x32xf32, #tpu.memory_space<vmem>>, vector<8x32xf32>,
    %c0_34 = arith.constant 0 : index
    %c0_35 = arith.constant 0 : index
    %80 = vector.load %arg8[%c0_34, %c0_35] : memref<8x32xf32, #tpu.memory_space<vmem>>, vector<8x32xf32>
    tpu.vector_store %arg8[%c0_34, %c0_35], %76 {strides = array<i32>} : memref<8x32xf32, #tpu.memory_space<vmem>>, vector<8x32xf32>,
    %c0_36 = arith.constant 0 : index
    %c0_37 = arith.constant 0 : index
    %81 = vector.load %arg6[%c0_36, %c0_37] : memref<8x64xf32, #tpu.memory_space<vmem>>, vector<8x32xf32>
    tpu.vector_store %arg6[%c0_36, %c0_37], %46 {strides = array<i32>} : memref<8x64xf32, #tpu.memory_space<vmem>>, vector<8x32xf32>,
    %c0_38 = arith.constant 0 : index
    %c32 = arith.constant 32 : index
    %82 = vector.load %arg6[%c0_38, %c32] : memref<8x64xf32, #tpu.memory_space<vmem>>, vector<8x32xf32>
    tpu.vector_store %arg6[%c0_38, %c32], %78 {strides = array<i32>} : memref<8x64xf32, #tpu.memory_space<vmem>>, vector<8x32xf32>,
    %c0_39 = arith.constant 0 : index
    %c0_40 = arith.constant 0 : index
    %c0_41 = arith.constant 0 : index
    %83 = vector.load %arg4[%c0_39, %c0_40, %c0_41] : memref<1x8x32xf32, #tpu.memory_space<vmem>>, vector<1x8x32xf32>
    %84 = vector.shape_cast %83 : vector<1x8x32xf32> to vector<8x32xf32>
    %85 = vector.shape_cast %46 : vector<8x32xf32> to vector<1x8x32xf32>
    tpu.vector_store %arg4[%c0_39, %c0_40, %c0_41], %85 {strides = array<i32>} : memref<1x8x32xf32, #tpu.memory_space<vmem>>, vector<1x8x32xf32>,
    %c0_42 = arith.constant 0 : index
    %c0_43 = arith.constant 0 : index
    %c0_44 = arith.constant 0 : index
    %86 = vector.load %arg5[%c0_42, %c0_43, %c0_44] : memref<1x8x32xf32, #tpu.memory_space<vmem>>, vector<1x8x32xf32>
    %87 = vector.shape_cast %86 : vector<1x8x32xf32> to vector<8x32xf32>
    %88 = vector.shape_cast %78 : vector<8x32xf32> to vector<1x8x32xf32>
    tpu.vector_store %arg5[%c0_42, %c0_43, %c0_44], %88 {strides = array<i32>} : memref<1x8x32xf32, #tpu.memory_space<vmem>>, vector<1x8x32xf32>,
    return
  }
  func.func @transform_0(%arg0: i32) -> (i32, i32, i32) {
    %c0_i32 = arith.constant 0 : i32
    %c0_i32_0 = arith.constant 0 : i32
    %c0_i32_1 = arith.constant 0 : i32
    return %arg0, %c0_i32, %c0_i32_0 : i32, i32, i32
  }
  func.func @transform_1(%arg0: i32) -> (i32, i32, i32) {
    %c25_i32 = arith.constant 25 : i32
    %0 = arith.subi %c25_i32, %arg0 : i32
    %c0_i32 = arith.constant 0 : i32
    %c1_i32 = arith.constant 1 : i32
    %c0_i32_0 = arith.constant 0 : i32
    return %0, %c0_i32, %c1_i32 : i32, i32, i32
  }
  func.func @transform_2(%arg0: i32) -> (i32, i32) {
    %c0_i32 = arith.constant 0 : i32
    %c0_i32_0 = arith.constant 0 : i32
    %c0_i32_1 = arith.constant 0 : i32
    return %c0_i32, %c0_i32_0 : i32, i32
  }
  func.func @transform_3(%arg0: i32) -> (i32, i32, i32) {
    %c0_i32 = arith.constant 0 : i32
    %c0_i32_0 = arith.constant 0 : i32
    %c0_i32_1 = arith.constant 0 : i32
    return %arg0, %c0_i32, %c0_i32_0 : i32, i32, i32
  }
  func.func @transform_4(%arg0: i32) -> (i32, i32, i32) {
    %c25_i32 = arith.constant 25 : i32
    %0 = arith.subi %c25_i32, %arg0 : i32
    %c0_i32 = arith.constant 0 : i32
    %c0_i32_0 = arith.constant 0 : i32
    %c0_i32_1 = arith.constant 0 : i32
    return %0, %c0_i32, %c0_i32_0 : i32, i32, i32
  }
}

module attributes {stable_mosaic.version = 11 : i64} {
  func.func @_mm_fused_kernel(%arg0: i32, %arg1: i32, %arg2: i32, %arg3: memref<128x128xbf16, #tpu.memory_space<vmem>>, %arg4: memref<128x128xbf16, #tpu.memory_space<vmem>>, %arg5: memref<1x128xf32, #tpu.memory_space<vmem>>, %arg6: memref<128x128xf32, #tpu.memory_space<vmem>>, %arg7: memref<128x128xf32, #tpu.memory_space<vmem>>) attributes {dimension_semantics = [#tpu.dimension_semantics<parallel>, #tpu.dimension_semantics<parallel>, #tpu.dimension_semantics<arbitrary>], iteration_bounds = array<i64: 2, 1, 1>, scalar_prefetch = 0 : i64, scratch_operands = 1 : i64, tpu.core_type = #tpu.core_type<tc>, window_params = [{transform_indices = @transform_0, window_bounds = array<i64: 128, 128>}, {transform_indices = @transform_1, window_bounds = array<i64: 128, 128>}, {transform_indices = @transform_2, window_bounds = array<i64: 1, 128>}, {transform_indices = @transform_3, window_bounds = array<i64: 128, 128>}]} {
    %c0_i32 = arith.constant 0 : i32
    %0 = arith.cmpi eq, %arg2, %c0_i32 : i32
    %1 = arith.extui %0 : i1 to i32
    %c0_i32_0 = arith.constant 0 : i32
    %2 = arith.cmpi ne, %1, %c0_i32_0 : i32
    scf.if %2 {
      %cst_10 = arith.constant 0.000000e+00 : f32
      %12 = vector.broadcast %cst_10 : f32 to vector<128x128xf32>
      %c0_11 = arith.constant 0 : index
      %c0_12 = arith.constant 0 : index
      %13 = vector.load %arg7[%c0_11, %c0_12] : memref<128x128xf32, #tpu.memory_space<vmem>>, vector<128x128xf32>
      tpu.vector_store %arg7[%c0_11, %c0_12], %12 {strides = array<i32>} : memref<128x128xf32, #tpu.memory_space<vmem>>, vector<128x128xf32>,
    } else {
    }
    %c0 = arith.constant 0 : index
    %c0_1 = arith.constant 0 : index
    %3 = vector.load %arg7[%c0, %c0_1] : memref<128x128xf32, #tpu.memory_space<vmem>>, vector<128x128xf32>
    %c0_2 = arith.constant 0 : index
    %c0_3 = arith.constant 0 : index
    %4 = vector.load %arg3[%c0_2, %c0_3] : memref<128x128xbf16, #tpu.memory_space<vmem>>, vector<128x128xbf16>
    %c0_4 = arith.constant 0 : index
    %c0_5 = arith.constant 0 : index
    %5 = vector.load %arg4[%c0_4, %c0_5] : memref<128x128xbf16, #tpu.memory_space<vmem>>, vector<128x128xbf16>
    %cst = arith.constant dense<0.000000e+00> : vector<128x128xf32>
    %6 = tpu.matmul %4, %5, %cst {dimension_numbers = #tpu.dot_dimension_numbers<[1], [0], [0], [1], [0, 0, 1, 1], [], []>} : vector<128x128xbf16>, vector<128x128xbf16>, vector<128x128xf32> -> vector<128x128xf32>
    %7 = arith.addf %3, %6 : vector<128x128xf32>
    %c0_6 = arith.constant 0 : index
    %c0_7 = arith.constant 0 : index
    %8 = vector.load %arg7[%c0_6, %c0_7] : memref<128x128xf32, #tpu.memory_space<vmem>>, vector<128x128xf32>
    tpu.vector_store %arg7[%c0_6, %c0_7], %7 {strides = array<i32>} : memref<128x128xf32, #tpu.memory_space<vmem>>, vector<128x128xf32>,
    %c0_i32_8 = arith.constant 0 : i32
    %9 = arith.cmpi eq, %arg2, %c0_i32_8 : i32
    %10 = arith.extui %9 : i1 to i32
    %c0_i32_9 = arith.constant 0 : i32
    %11 = arith.cmpi ne, %10, %c0_i32_9 : i32
    scf.if %11 {
      %c0_10 = arith.constant 0 : index
      %c0_11 = arith.constant 0 : index
      %12 = vector.load %arg7[%c0_10, %c0_11] : memref<128x128xf32, #tpu.memory_space<vmem>>, vector<128x128xf32>
      %c0_12 = arith.constant 0 : index
      %c0_13 = arith.constant 0 : index
      %13 = vector.load %arg5[%c0_12, %c0_13] : memref<1x128xf32, #tpu.memory_space<vmem>>, vector<1x128xf32>
      %14 = vector.broadcast %13 : vector<1x128xf32> to vector<128x128xf32>
      %15 = arith.addf %12, %14 : vector<128x128xf32>
      %cst_14 = arith.constant dense<0xFF800000> : vector<128xf32>
      %16 = vector.multi_reduction <maximumf>, %15, %cst_14 [1] : vector<128x128xf32> to vector<128xf32>
      %17 = vector.shape_cast %16 : vector<128xf32> to vector<128x1xf32>
      %18 = vector.broadcast %17 : vector<128x1xf32> to vector<128x128xf32>
      %19 = arith.subf %15, %18 : vector<128x128xf32>
      %20 = math.exp %19 : vector<128x128xf32>
      %cst_15 = arith.constant dense<0.000000e+00> : vector<128xf32>
      %21 = vector.multi_reduction <add>, %20, %cst_15 [1] : vector<128x128xf32> to vector<128xf32>
      %22 = vector.shape_cast %21 : vector<128xf32> to vector<128x1xf32>
      %23 = tpu.reciprocal %22 {approx = true} : vector<128x1xf32> -> vector<128x1xf32>
      %24 = vector.broadcast %23 : vector<128x1xf32> to vector<128x128xf32>
      %25 = arith.mulf %20, %24 : vector<128x128xf32>
      %c0_16 = arith.constant 0 : index
      %c0_17 = arith.constant 0 : index
      %26 = vector.load %arg6[%c0_16, %c0_17] : memref<128x128xf32, #tpu.memory_space<vmem>>, vector<128x128xf32>
      tpu.vector_store %arg6[%c0_16, %c0_17], %25 {strides = array<i32>} : memref<128x128xf32, #tpu.memory_space<vmem>>, vector<128x128xf32>,
    } else {
    }
    return
  }
  func.func @transform_0(%arg0: i32, %arg1: i32, %arg2: i32) -> (i32, i32) {
    %c0_i32 = arith.constant 0 : i32
    return %arg0, %arg2 : i32, i32
  }
  func.func @transform_1(%arg0: i32, %arg1: i32, %arg2: i32) -> (i32, i32) {
    %c0_i32 = arith.constant 0 : i32
    return %arg2, %arg1 : i32, i32
  }
  func.func @transform_2(%arg0: i32, %arg1: i32, %arg2: i32) -> (i32, i32) {
    %c0_i32 = arith.constant 0 : i32
    %c0_i32_0 = arith.constant 0 : i32
    return %c0_i32, %arg1 : i32, i32
  }
  func.func @transform_3(%arg0: i32, %arg1: i32, %arg2: i32) -> (i32, i32) {
    %c0_i32 = arith.constant 0 : i32
    return %arg0, %arg1 : i32, i32
  }
}

</mosaic_0001>

<bundles_post_ra>
// kernel: deepspeech_ken_forward.7
= control target key start
LH: loop header
LB: loop body
LE: loop exit
PB: predicated region body
PF: predicated region fallthrough
CT: control target
= control target key end

     0   :  { %s652_s1 = inlined_call_operand.vmem [shape: bf16[128,128], index: 1, kind: input, shape index: {}]   ;;  %s653_s0 = inlined_call_operand.vmem [shape: bf16[128,128], index: 0, kind: input, shape index: {}]   ;;  %s654_s2 = inlined_call_operand.vmem [shape: f32[1,128], index: 2, kind: input, shape index: {}]   ;;  %s655_s3 = inlined_call_operand.vmem [shape: f32[128,128], index: 3, kind: output, shape index: {}]  }
   0x1   :  { %v499_v0 = vld [vmem:[%s652_s1 + $0x38] sm:$0xff]   ;;  %v500_v1 = vld [vmem:[%s652_s1 + $0x30] sm:$0xff]   ;;  %v501_v2 = vld [vmem:[%s652_s1 + $0x28] sm:$0xff]  }
   0x2   :  { %451 = vmatprep.subr.bf16.mxu0 %v499_v0  ;;  %483 = vmatprep.subr.bf16.mxu1 %v499_v0  ;;  %v502_v3 = vld [vmem:[%s652_s1 + $0x20] sm:$0xff]   ;;  %v503_v6 = vld [vmem:[%s652_s1 + $0x18] sm:$0xff]   ;;  %v504_v7 = vld [vmem:[%s652_s1 + $0x10] sm:$0xff]  }
   0x3   :  { %452 = vmatpush3.bf16.msra.mxu0 %v499_v0  ;;  %491 = vmatpush3.bf16.msra.mxu1 %v499_v0  ;;  %v507_v4 = vld [vmem:[%s653_s0] sm:$0xff]   ;;  %v505_v8 = vld [vmem:[%s652_s1 + $0x8] sm:$0xff]   ;;  %v511_v12 = vld [vmem:[%s653_s0 + $0x10] sm:$0xff]  }
   0x4   :  { %453 = vmatprep.subr.bf16.mxu0 %v500_v1  ;;  %484 = vmatprep.subr.bf16.mxu1 %v500_v1  ;;  %v508_v5 = vld [vmem:[%s653_s0 + $0x20] sm:$0xff]   ;;  %v509_v10 = vld [vmem:[%s653_s0 + $0x8] sm:$0xff]   ;;  %v512_v13 = vld [vmem:[%s653_s0 + $0x30] sm:$0xff]  }
   0x5   :  { %467 = vmatprep.mubr.bf16.mxu0 %v507_v4  ;;  %475 = vmatprep.mubr.bf16.mxu1 %v508_v5  ;;  %v506_v9 = vld [vmem:[%s652_s1] sm:$0xff]   ;;  %v510_v11 = vld [vmem:[%s653_s0 + $0x28] sm:$0xff]   ;;  %v513_v14 = vld [vmem:[%s653_s0 + $0x18] sm:$0xff]  }
   0x6   :  { %v514_v15 = vld [vmem:[%s653_s0 + $0x38] sm:$0xff]   ;;  %v586_v16 = vld [vmem:[%s654_s2] ss:$0 sm:$0xff] }
   0x7   :  { %454 = vmatpush3.bf16.msra.mxu0 %v500_v1  ;;  %492 = vmatpush3.bf16.msra.mxu1 %v500_v1 }
   0x8   :  { %455 = vmatprep.subr.bf16.mxu0 %v501_v2  ;;  %485 = vmatprep.subr.bf16.mxu1 %v501_v2 }
   0xb   :  { %456 = vmatpush3.bf16.msra.mxu0 %v501_v2  ;;  %493 = vmatpush3.bf16.msra.mxu1 %v501_v2 }
   0xc   :  { %457 = vmatprep.subr.bf16.mxu0 %v502_v3  ;;  %486 = vmatprep.subr.bf16.mxu1 %v502_v3 }
   0xf   :  { %458 = vmatpush3.bf16.msra.mxu0 %v502_v3  ;;  %494 = vmatpush3.bf16.msra.mxu1 %v502_v3 }
  0x10   :  { %459 = vmatprep.subr.bf16.mxu0 %v503_v6  ;;  %487 = vmatprep.subr.bf16.mxu1 %v503_v6 }
  0x13   :  { %460 = vmatpush3.bf16.msra.mxu0 %v503_v6  ;;  %495 = vmatpush3.bf16.msra.mxu1 %v503_v6 }
  0x14   :  { %461 = vmatprep.subr.bf16.mxu0 %v504_v7  ;;  %488 = vmatprep.subr.bf16.mxu1 %v504_v7 }
  0x17   :  { %462 = vmatpush3.bf16.msra.mxu0 %v504_v7  ;;  %496 = vmatpush3.bf16.msra.mxu1 %v504_v7 }
  0x18   :  { %463 = vmatprep.subr.bf16.mxu0 %v505_v8  ;;  %489 = vmatprep.subr.bf16.mxu1 %v505_v8 }
  0x1b   :  { %464 = vmatpush3.bf16.msra.mxu0 %v505_v8  ;;  %497 = vmatpush3.bf16.msra.mxu1 %v505_v8 }
  0x1c   :  { %465 = vmatprep.subr.bf16.mxu0 %v506_v9  ;;  %490 = vmatprep.subr.bf16.mxu1 %v506_v9 }
  0x1f   :  { %466 = vmatpush3.bf16.msra.mxu0 %v506_v9  ;;  %498 = vmatpush3.bf16.msra.mxu1 %v506_v9 }
  0x22   :  { %468 = vmatmul.mubr.bf16.vlgmr.msra.gmra.mxu0 %v509_v10  ;;  %476 = vmatmul.mubr.bf16.vlgmr.msra.gmra.mxu1 %v510_v11 }
  0x23   :  { %471 = vmatprep.mubr.bf16.mxu0 %v511_v12  ;;  %479 = vmatprep.mubr.bf16.mxu1 %v512_v13 }
  0x2a   :  { %472 = vmatmul.mubr.bf16.gmra.mxu0 %v513_v14  ;;  %480 = vmatmul.mubr.bf16.gmra.mxu1 %v514_v15 }
  0xe2   :  { %v469_v17 = vpop.f32.mrf.mxu0  ;;  %v477_v18 = vpop.f32.mrf.mxu1 }
  0xe3   :  { %v336_v19 = vadd.f32 %v469_v17, %v586_v16  ;;  %v344_v20 = vadd.f32 %v477_v18, %v586_v16 }
  0xe4   :  { %v213_v21 = vpop.f32.mrf.mxu0  ;;  %v245_v22 = vpop.f32.mrf.mxu1 }
  0xe5   :  { %vm352_vm0 = vcmp.ge.f32.partialorder %v336_v19, 0.0  ;;  %v368_v23 = vmul.f32 32.0, %v336_v19  ;;  %vm360_vm1 = vcmp.ge.f32.partialorder %v344_v20, 0.0  ;;  %v376_v24 = vmul.f32 32.0, %v344_v20 }
  0xe6   :  { %v334_v25 = vadd.f32 %v586_v16, %v213_v21  ;;  %v342_v26 = vadd.f32 %v586_v16, %v245_v22  ;;  %v470_v27 = vpop.f32.mrf.mxu0  ;;  %v478_v28 = vpop.f32.mrf.mxu1 }
  0xe7   :  { %v384_v29 = vsel %vm352_vm0, %v336_v19, %v368_v23  ;;  %v392_v30 = vsel %vm360_vm1, %v344_v20, %v376_v24  ;;  %v337_v31 = vadd.f32 %v470_v27, %v586_v16  ;;  %v345_v32 = vadd.f32 %v478_v28, %v586_v16 }
  0xe8   :  { %400 = vst [vmem:[%s655_s3 + $0x10] sm:$0xff] %v384_v29  ;;  %408 = vst [vmem:[%s655_s3 + $0x50] sm:$0xff] %v392_v30  ;;  %vm350_vm2 = vcmp.ge.f32.partialorder %v334_v25, 0.0  ;;  %v366_v33 = vmul.f32 32.0, %v334_v25  ;;  %vm358_vm3 = vcmp.ge.f32.partialorder %v342_v26, 0.0  ;;  %v374_v34 = vmul.f32 32.0, %v342_v26  ;;  %v216_v35 = vpop.f32.mrf.mxu0  ;;  %v248_v36 = vpop.f32.mrf.mxu1 }
  0xe9   :  { %vm353_vm4 = vcmp.ge.f32.partialorder %v337_v31, 0.0  ;;  %v369_v37 = vmul.f32 32.0, %v337_v31  ;;  %vm361_vm5 = vcmp.ge.f32.partialorder %v345_v32, 0.0  ;;  %v377_v38 = vmul.f32 32.0, %v345_v32 }
  0xea   :  { %v382_v39 = vsel %vm350_vm2, %v334_v25, %v366_v33  ;;  %v390_v40 = vsel %vm358_vm3, %v342_v26, %v374_v34  ;;  %v335_v41 = vadd.f32 %v586_v16, %v216_v35  ;;  %v343_v42 = vadd.f32 %v586_v16, %v248_v36  ;;  %v473_v43 = vpop.f32.mrf.mxu0  ;;  %v481_v44 = vpop.f32.mrf.mxu1 }
  0xeb   :  { %398 = vst [vmem:[%s655_s3] sm:$0xff] %v382_v39  ;;  %406 = vst [vmem:[%s655_s3 + $0x40] sm:$0xff] %v390_v40  ;;  %v385_v45 = vsel %vm353_vm4, %v337_v31, %v369_v37  ;;  %v393_v46 = vsel %vm361_vm5, %v345_v32, %v377_v38  ;;  %v340_v47 = vadd.f32 %v473_v43, %v586_v16 }
  0xec   :  { %v348_v48 = vadd.f32 %v481_v44, %v586_v16  ;;  %401 = vst [vmem:[%s655_s3 + $0x18] sm:$0xff] %v385_v45  ;;  %409 = vst [vmem:[%s655_s3 + $0x58] sm:$0xff] %v393_v46  ;;  %vm351_vm6 = vcmp.ge.f32.partialorder %v335_v41, 0.0  ;;  %v367_v49 = vmul.f32 32.0, %v335_v41  ;;  %vm359_vm7 = vcmp.ge.f32.partialorder %v343_v42, 0.0  ;;  %v229_v51 = vpop.f32.mrf.mxu0  ;;  %v261_v52 = vpop.f32.mrf.mxu1 }
  0xed   :  { %v375_v50 = vmul.f32 32.0, %v343_v42  ;;  %vm356_vm8 = vcmp.ge.f32.partialorder %v340_v47, 0.0  ;;  %v372_v53 = vmul.f32 32.0, %v340_v47  ;;  %v338_v57 = vadd.f32 %v586_v16, %v229_v51 }
  0xee   :  { %vm364_vm9 = vcmp.ge.f32.partialorder %v348_v48, 0.0  ;;  %v380_v54 = vmul.f32 32.0, %v348_v48  ;;  %v383_v55 = vsel %vm351_vm6, %v335_v41, %v367_v49  ;;  %v346_v58 = vadd.f32 %v586_v16, %v261_v52  ;;  %v474_v59 = vpop.f32.mrf.mxu0  ;;  %v482_v60 = vpop.f32.mrf.mxu1 }
  0xef   :  { %v391_v56 = vsel %vm359_vm7, %v343_v42, %v375_v50  ;;  %399 = vst [vmem:[%s655_s3 + $0x8] sm:$0xff] %v383_v55  ;;  %v388_v61 = vsel %vm356_vm8, %v340_v47, %v372_v53  ;;  %v341_v63 = vadd.f32 %v474_v59, %v586_v16  ;;  %v349_v0 = vadd.f32 %v482_v60, %v586_v16 }
  0xf0   :  { %407 = vst [vmem:[%s655_s3 + $0x48] sm:$0xff] %v391_v56  ;;  %v396_v62 = vsel %vm364_vm9, %v348_v48, %v380_v54  ;;  %404 = vst [vmem:[%s655_s3 + $0x30] sm:$0xff] %v388_v61  ;;  %vm354_vm10 = vcmp.ge.f32.partialorder %v338_v57, 0.0  ;;  %v370_v1 = vmul.f32 32.0, %v338_v57  ;;  %vm362_vm11 = vcmp.ge.f32.partialorder %v346_v58, 0.0  ;;  %v232_v3 = vpop.f32.mrf.mxu0  ;;  %v264_v4 = vpop.f32.mrf.mxu1 }
  0xf1   :  { %412 = vst [vmem:[%s655_s3 + $0x70] sm:$0xff] %v396_v62  ;;  %v378_v2 = vmul.f32 32.0, %v346_v58  ;;  %vm357_vm12 = vcmp.ge.f32.partialorder %v341_v63, 0.0  ;;  %v373_v5 = vmul.f32 32.0, %v341_v63  ;;  %vm365_vm13 = vcmp.ge.f32.partialorder %v349_v0, 0.0 }
  0xf2   :  { %v381_v6 = vmul.f32 32.0, %v349_v0  ;;  %v386_v7 = vsel %vm354_vm10, %v338_v57, %v370_v1  ;;  %v339_v9 = vadd.f32 %v586_v16, %v232_v3  ;;  %v347_v10 = vadd.f32 %v586_v16, %v264_v4 }
  0xf3   :  { %v394_v8 = vsel %vm362_vm11, %v346_v58, %v378_v2  ;;  %402 = vst [vmem:[%s655_s3 + $0x20] sm:$0xff] %v386_v7  ;;  %v389_v11 = vsel %vm357_vm12, %v341_v63, %v373_v5 }
  0xf4   :  { %410 = vst [vmem:[%s655_s3 + $0x60] sm:$0xff] %v394_v8  ;;  %v397_v12 = vsel %vm365_vm13, %v349_v0, %v381_v6  ;;  %405 = vst [vmem:[%s655_s3 + $0x38] sm:$0xff] %v389_v11  ;;  %vm355_vm14 = vcmp.ge.f32.partialorder %v339_v9, 0.0  ;;  %v371_v13 = vmul.f32 32.0, %v339_v9  ;;  %vm363_vm15 = vcmp.ge.f32.partialorder %v347_v10, 0.0 }
  0xf5   :  { %413 = vst [vmem:[%s655_s3 + $0x78] sm:$0xff] %v397_v12  ;;  %v379_v14 = vmul.f32 32.0, %v347_v10 }
  0xf6   :  { %v387_v15 = vsel %vm355_vm14, %v339_v9, %v371_v13 }
  0xf7   :  { %v395_v16 = vsel %vm363_vm15, %v347_v10, %v379_v14  ;;  %403 = vst [vmem:[%s655_s3 + $0x28] sm:$0xff] %v387_v15 }
  0xf8   :  { %411 = vst [vmem:[%s655_s3 + $0x68] sm:$0xff] %v395_v16 }

// kernel: deepspeech_ken_forward.8
= control target key start
LH: loop header
LB: loop body
LE: loop exit
PB: predicated region body
PF: predicated region fallthrough
CT: control target
= control target key end

     0   :  { %s852_s1 = inlined_call_operand.vmem [shape: bf16[256,128], index: 1, kind: input, shape index: {}]   ;;  %s853_s0 = inlined_call_operand.vmem [shape: bf16[128,256], index: 0, kind: input, shape index: {}]   ;;  %s854_s2 = inlined_call_operand.vmem [shape: f32[1,128], index: 2, kind: input, shape index: {}]   ;;  %s855_s3 = inlined_call_operand.vmem [shape: f32[128,128], index: 3, kind: output, shape index: {}]  }
   0x1   :  { %v627_v0 = vld [vmem:[%s852_s1 + $0x78] sm:$0xff]   ;;  %v629_v2 = vld [vmem:[%s852_s1 + $0x70] sm:$0xff]   ;;  %v631_v4 = vld [vmem:[%s852_s1 + $0x68] sm:$0xff]  }
   0x2   :  { %v628_v1 = vld [vmem:[%s852_s1 + $0x38] sm:$0xff]   ;;  %547 = vmatprep.subr.bf16.mxu0 %v627_v0  ;;  %611 = vmatprep.subr.bf16.mxu1 %v627_v0  ;;  %v630_v3 = vld [vmem:[%s852_s1 + $0x30] sm:$0xff]   ;;  %v632_v5 = vld [vmem:[%s852_s1 + $0x28] sm:$0xff]  }
   0x3   :  { %548 = vmatpush3.bf16.msra.mxu0 %v628_v1  ;;  %619 = vmatpush3.bf16.msra.mxu1 %v628_v1  ;;  %v633_v6 = vld [vmem:[%s852_s1 + $0x60] sm:$0xff]   ;;  %v635_v8 = vld [vmem:[%s852_s1 + $0x58] sm:$0xff]   ;;  %v637_v10 = vld [vmem:[%s852_s1 + $0x50] sm:$0xff]  }
   0x4   :  { %549 = vmatprep.subr.bf16.mxu0 %v629_v2  ;;  %612 = vmatprep.subr.bf16.mxu1 %v629_v2  ;;  %v634_v7 = vld [vmem:[%s852_s1 + $0x20] sm:$0xff]   ;;  %v636_v9 = vld [vmem:[%s852_s1 + $0x18] sm:$0xff]   ;;  %v638_v13 = vld [vmem:[%s852_s1 + $0x10] sm:$0xff]  }
   0x5   :  { %v645_v11 = vld [vmem:[%s853_s0 + $0x4] ss:$8 sps:$4 sm:$0xff]   ;;  %v643_v18 = vld [vmem:[%s853_s0] ss:$8 sps:$4 sm:$0xff]   ;;  %v649_v20 = vld [vmem:[%s853_s0 + $0x14] ss:$8 sps:$4 sm:$0xff]  }
   0x6   :  { %v648_v12 = vld [vmem:[%s853_s0 + $0x44] ss:$8 sps:$4 sm:$0xff]   ;;  %307 = vmatprep.mubr.bf16.mxu0 %v645_v11  ;;  %v646_v19 = vld [vmem:[%s853_s0 + $0x40] ss:$8 sps:$4 sm:$0xff]   ;;  %v651_v21 = vld [vmem:[%s853_s0 + $0x54] ss:$8 sps:$4 sm:$0xff]  }
   0x7   :  { %550 = vmatpush3.bf16.msra.mxu0 %v630_v3  ;;  %620 = vmatpush3.bf16.msra.mxu1 %v630_v3  ;;  %v639_v14 = vld [vmem:[%s852_s1 + $0x48] sm:$0xff]   ;;  %v641_v16 = vld [vmem:[%s852_s1 + $0x40] sm:$0xff]   ;;  %v653_v22 = vld [vmem:[%s853_s0 + $0x10] ss:$8 sps:$4 sm:$0xff]  }
   0x8   :  { %551 = vmatprep.subr.bf16.mxu0 %v631_v4  ;;  %613 = vmatprep.subr.bf16.mxu1 %v631_v4  ;;  %v640_v15 = vld [vmem:[%s852_s1 + $0x8] sm:$0xff]   ;;  %v642_v17 = vld [vmem:[%s852_s1] sm:$0xff]   ;;  %v654_v23 = vld [vmem:[%s853_s0 + $0x50] ss:$8 sps:$4 sm:$0xff]  }
   0x9   :  { %339 = vmatprep.mubr.bf16.mxu1 %v648_v12  ;;  %v655_v24 = vld [vmem:[%s853_s0 + $0x24] ss:$8 sps:$4 sm:$0xff]   ;;  %v659_v26 = vld [vmem:[%s853_s0 + $0x20] ss:$8 sps:$4 sm:$0xff]   ;;  %v661_v28 = vld [vmem:[%s853_s0 + $0x34] ss:$8 sps:$4 sm:$0xff]  }
   0xa   :  { %v657_v25 = vld [vmem:[%s853_s0 + $0x64] ss:$8 sps:$4 sm:$0xff]   ;;  %v660_v27 = vld [vmem:[%s853_s0 + $0x60] ss:$8 sps:$4 sm:$0xff]   ;;  %v663_v29 = vld [vmem:[%s853_s0 + $0x74] ss:$8 sps:$4 sm:$0xff]  }
   0xb   :  { %552 = vmatpush3.bf16.msra.mxu0 %v632_v5  ;;  %621 = vmatpush3.bf16.msra.mxu1 %v632_v5  ;;  %v665_v30 = vld [vmem:[%s853_s0 + $0x30] ss:$8 sps:$4 sm:$0xff]   ;;  %v786_v35 = vld [vmem:[%s854_s2] ss:$0 sm:$0xff] }
   0xc   :  { %553 = vmatprep.subr.bf16.mxu0 %v633_v6  ;;  %614 = vmatprep.subr.bf16.mxu1 %v633_v6  ;;  %v666_v31 = vld [vmem:[%s853_s0 + $0x70] ss:$8 sps:$4 sm:$0xff]  }
   0xf   :  { %554 = vmatpush3.bf16.msra.mxu0 %v634_v7  ;;  %622 = vmatpush3.bf16.msra.mxu1 %v634_v7 }
  0x10   :  { %555 = vmatprep.subr.bf16.mxu0 %v635_v8  ;;  %615 = vmatprep.subr.bf16.mxu1 %v635_v8 }
  0x13   :  { %556 = vmatpush3.bf16.msra.mxu0 %v636_v9  ;;  %623 = vmatpush3.bf16.msra.mxu1 %v636_v9 }
  0x14   :  { %557 = vmatprep.subr.bf16.mxu0 %v637_v10  ;;  %616 = vmatprep.subr.bf16.mxu1 %v637_v10 }
  0x17   :  { %558 = vmatpush3.bf16.msra.mxu0 %v638_v13  ;;  %624 = vmatpush3.bf16.msra.mxu1 %v638_v13 }
  0x18   :  { %559 = vmatprep.subr.bf16.mxu0 %v639_v14  ;;  %617 = vmatprep.subr.bf16.mxu1 %v639_v14 }
  0x1b   :  { %560 = vmatpush3.bf16.msra.mxu0 %v640_v15  ;;  %625 = vmatpush3.bf16.msra.mxu1 %v640_v15 }
  0x1c   :  { %561 = vmatprep.subr.bf16.mxu0 %v641_v16  ;;  %618 = vmatprep.subr.bf16.mxu1 %v641_v16 }
  0x1f   :  { %562 = vmatpush3.bf16.msra.mxu0 %v642_v17  ;;  %626 = vmatpush3.bf16.msra.mxu1 %v642_v17 }
  0x22   :  { %308 = vmatmul.mubr.bf16.vlgmr.msra.gmra.mxu0 %v643_v18  ;;  %340 = vmatmul.mubr.bf16.vlgmr.msra.gmra.mxu1 %v646_v19 }
  0x23   :  { %315 = vmatprep.mubr.bf16.mxu0 %v649_v20  ;;  %347 = vmatprep.mubr.bf16.mxu1 %v651_v21 }
  0x2a   :  { %316 = vmatmul.mubr.bf16.gmra.mxu0 %v653_v22  ;;  %348 = vmatmul.mubr.bf16.gmra.mxu1 %v654_v23 }
  0x2b   :  { %323 = vmatprep.mubr.bf16.mxu0 %v655_v24  ;;  %355 = vmatprep.mubr.bf16.mxu1 %v657_v25 }
  0x32   :  { %324 = vmatmul.mubr.bf16.gmra.mxu0 %v659_v26  ;;  %356 = vmatmul.mubr.bf16.gmra.mxu1 %v660_v27 }
  0x33   :  { %331 = vmatprep.mubr.bf16.mxu0 %v661_v28  ;;  %363 = vmatprep.mubr.bf16.mxu1 %v663_v29 }
  0x3a   :  { %332 = vmatmul.mubr.bf16.gmra.mxu0 %v665_v30  ;;  %364 = vmatmul.mubr.bf16.gmra.mxu1 %v666_v31 }
  0xe2   :  { %v563_v32 = vpop.f32.mrf.mxu0  ;;  %v587_v33 = vpop.f32.mrf.mxu1 }
  0xe4   :  { %v564_v34 = vpop.f32.mrf.mxu0  ;;  %v588_v36 = vpop.f32.mrf.mxu1 }
  0xe5   :  { %v565_v37 = vadd.f32 %v564_v34, %v563_v32  ;;  %v589_v38 = vadd.f32 %v588_v36, %v587_v33 }
  0xe6   :  { %v566_v39 = vpop.f32.mrf.mxu0  ;;  %v590_v40 = vpop.f32.mrf.mxu1 }
  0xe7   :  { %v430_v41 = vadd.f32 %v565_v37, %v786_v35  ;;  %v438_v42 = vadd.f32 %v589_v38, %v786_v35 }
  0xe8   :  { %v567_v43 = vpop.f32.mrf.mxu0  ;;  %v591_v44 = vpop.f32.mrf.mxu1 }
  0xe9   :  { %vm446_vm0 = vcmp.ge.f32.partialorder %v430_v41, 0.0  ;;  %v462_v45 = vmul.f32 32.0, %v430_v41  ;;  %vm454_vm1 = vcmp.ge.f32.partialorder %v438_v42, 0.0  ;;  %v470_v46 = vmul.f32 32.0, %v438_v42 }
  0xea   :  { %v568_v47 = vadd.f32 %v567_v43, %v566_v39  ;;  %v592_v48 = vadd.f32 %v591_v44, %v590_v40  ;;  %v569_v49 = vpop.f32.mrf.mxu0  ;;  %v593_v50 = vpop.f32.mrf.mxu1 }
  0xeb   :  { %v478_v51 = vsel %vm446_vm0, %v430_v41, %v462_v45  ;;  %v486_v52 = vsel %vm454_vm1, %v438_v42, %v470_v46 }
  0xec   :  { %494 = vst [vmem:[%s855_s3] sm:$0xff] %v478_v51  ;;  %502 = vst [vmem:[%s855_s3 + $0x40] sm:$0xff] %v486_v52  ;;  %v431_v53 = vadd.f32 %v568_v47, %v786_v35  ;;  %v439_v54 = vadd.f32 %v592_v48, %v786_v35  ;;  %v570_v55 = vpop.f32.mrf.mxu0  ;;  %v594_v56 = vpop.f32.mrf.mxu1 }
  0xed   :  { %v571_v57 = vadd.f32 %v570_v55, %v569_v49  ;;  %v595_v58 = vadd.f32 %v594_v56, %v593_v50 }
  0xee   :  { %vm447_vm2 = vcmp.ge.f32.partialorder %v431_v53, 0.0  ;;  %v463_v59 = vmul.f32 32.0, %v431_v53  ;;  %vm455_vm3 = vcmp.ge.f32.partialorder %v439_v54, 0.0  ;;  %v471_v60 = vmul.f32 32.0, %v439_v54  ;;  %v572_v61 = vpop.f32.mrf.mxu0  ;;  %v596_v62 = vpop.f32.mrf.mxu1 }
  0xef   :  { %v432_v63 = vadd.f32 %v571_v57, %v786_v35  ;;  %v440_v0 = vadd.f32 %v595_v58, %v786_v35 }
  0xf0   :  { %v479_v1 = vsel %vm447_vm2, %v431_v53, %v463_v59  ;;  %v487_v2 = vsel %vm455_vm3, %v439_v54, %v471_v60  ;;  %v573_v3 = vpop.f32.mrf.mxu0  ;;  %v597_v4 = vpop.f32.mrf.mxu1 }
  0xf1   :  { %495 = vst [vmem:[%s855_s3 + $0x8] sm:$0xff] %v479_v1  ;;  %503 = vst [vmem:[%s855_s3 + $0x48] sm:$0xff] %v487_v2  ;;  %vm448_vm4 = vcmp.ge.f32.partialorder %v432_v63, 0.0  ;;  %v464_v5 = vmul.f32 32.0, %v432_v63  ;;  %vm456_vm5 = vcmp.ge.f32.partialorder %v440_v0, 0.0  ;;  %v472_v6 = vmul.f32 32.0, %v440_v0 }
  0xf2   :  { %v574_v7 = vadd.f32 %v573_v3, %v572_v61  ;;  %v598_v8 = vadd.f32 %v597_v4, %v596_v62  ;;  %v575_v9 = vpop.f32.mrf.mxu0  ;;  %v599_v10 = vpop.f32.mrf.mxu1 }
  0xf3   :  { %v480_v11 = vsel %vm448_vm4, %v432_v63, %v464_v5  ;;  %v488_v12 = vsel %vm456_vm5, %v440_v0, %v472_v6 }
  0xf4   :  { %496 = vst [vmem:[%s855_s3 + $0x10] sm:$0xff] %v480_v11  ;;  %504 = vst [vmem:[%s855_s3 + $0x50] sm:$0xff] %v488_v12  ;;  %v433_v13 = vadd.f32 %v574_v7, %v786_v35  ;;  %v441_v14 = vadd.f32 %v598_v8, %v786_v35  ;;  %v576_v15 = vpop.f32.mrf.mxu0  ;;  %v600_v16 = vpop.f32.mrf.mxu1 }
  0xf5   :  { %v577_v17 = vadd.f32 %v576_v15, %v575_v9  ;;  %v601_v18 = vadd.f32 %v600_v16, %v599_v10 }
  0xf6   :  { %vm449_vm6 = vcmp.ge.f32.partialorder %v433_v13, 0.0  ;;  %v465_v19 = vmul.f32 32.0, %v433_v13  ;;  %vm457_vm7 = vcmp.ge.f32.partialorder %v441_v14, 0.0  ;;  %v473_v20 = vmul.f32 32.0, %v441_v14  ;;  %v578_v21 = vpop.f32.mrf.mxu0  ;;  %v602_v22 = vpop.f32.mrf.mxu1 }
  0xf7   :  { %v434_v23 = vadd.f32 %v577_v17, %v786_v35  ;;  %v442_v24 = vadd.f32 %v601_v18, %v786_v35 }
  0xf8   :  { %v481_v25 = vsel %vm449_vm6, %v433_v13, %v465_v19  ;;  %v489_v26 = vsel %vm457_vm7, %v441_v14, %v473_v20  ;;  %v579_v27 = vpop.f32.mrf.mxu0  ;;  %v603_v28 = vpop.f32.mrf.mxu1 }
  0xf9   :  { %497 = vst [vmem:[%s855_s3 + $0x18] sm:$0xff] %v481_v25  ;;  %505 = vst [vmem:[%s855_s3 + $0x58] sm:$0xff] %v489_v26  ;;  %vm450_vm8 = vcmp.ge.f32.partialorder %v434_v23, 0.0  ;;  %v466_v29 = vmul.f32 32.0, %v434_v23  ;;  %vm458_vm9 = vcmp.ge.f32.partialorder %v442_v24, 0.0  ;;  %v474_v30 = vmul.f32 32.0, %v442_v24 }
  0xfa   :  { %v580_v31 = vadd.f32 %v579_v27, %v578_v21  ;;  %v604_v32 = vadd.f32 %v603_v28, %v602_v22  ;;  %v581_v33 = vpop.f32.mrf.mxu0  ;;  %v605_v34 = vpop.f32.mrf.mxu1 }
  0xfb   :  { %v482_v36 = vsel %vm450_vm8, %v434_v23, %v466_v29  ;;  %v490_v37 = vsel %vm458_vm9, %v442_v24, %v474_v30 }
  0xfc   :  { %498 = vst [vmem:[%s855_s3 + $0x20] sm:$0xff] %v482_v36  ;;  %506 = vst [vmem:[%s855_s3 + $0x60] sm:$0xff] %v490_v37  ;;  %v435_v38 = vadd.f32 %v580_v31, %v786_v35  ;;  %v443_v39 = vadd.f32 %v604_v32, %v786_v35  ;;  %v582_v40 = vpop.f32.mrf.mxu0  ;;  %v606_v41 = vpop.f32.mrf.mxu1 }
  0xfd   :  { %v583_v42 = vadd.f32 %v582_v40, %v581_v33  ;;  %v607_v43 = vadd.f32 %v606_v41, %v605_v34 }
  0xfe   :  { %vm451_vm10 = vcmp.ge.f32.partialorder %v435_v38, 0.0  ;;  %v467_v44 = vmul.f32 32.0, %v435_v38  ;;  %vm459_vm11 = vcmp.ge.f32.partialorder %v443_v39, 0.0  ;;  %v475_v45 = vmul.f32 32.0, %v443_v39  ;;  %v584_v46 = vpop.f32.mrf.mxu0  ;;  %v608_v47 = vpop.f32.mrf.mxu1 }
  0xff   :  { %v436_v48 = vadd.f32 %v583_v42, %v786_v35  ;;  %v444_v49 = vadd.f32 %v607_v43, %v786_v35 }
 0x100   :  { %v483_v50 = vsel %vm451_vm10, %v435_v38, %v467_v44  ;;  %v491_v51 = vsel %vm459_vm11, %v443_v39, %v475_v45  ;;  %v585_v52 = vpop.f32.mrf.mxu0  ;;  %v609_v53 = vpop.f32.mrf.mxu1 }
 0x101   :  { %499 = vst [vmem:[%s855_s3 + $0x28] sm:$0xff] %v483_v50  ;;  %507 = vst [vmem:[%s855_s3 + $0x68] sm:$0xff] %v491_v51  ;;  %vm452_vm12 = vcmp.ge.f32.partialorder %v436_v48, 0.0  ;;  %v468_v54 = vmul.f32 32.0, %v436_v48  ;;  %vm460_vm13 = vcmp.ge.f32.partialorder %v444_v49, 0.0  ;;  %v476_v55 = vmul.f32 32.0, %v444_v49 }
 0x102   :  { %v586_v56 = vadd.f32 %v585_v52, %v584_v46  ;;  %v610_v57 = vadd.f32 %v609_v53, %v608_v47 }
 0x103   :  { %v484_v58 = vsel %vm452_vm12, %v436_v48, %v468_v54  ;;  %v492_v59 = vsel %vm460_vm13, %v444_v49, %v476_v55 }
 0x104   :  { %500 = vst [vmem:[%s855_s3 + $0x30] sm:$0xff] %v484_v58  ;;  %508 = vst [vmem:[%s855_s3 + $0x70] sm:$0xff] %v492_v59  ;;  %v437_v60 = vadd.f32 %v586_v56, %v786_v35  ;;  %v445_v61 = vadd.f32 %v610_v57, %v786_v35 }
 0x106   :  { %vm453_vm14 = vcmp.ge.f32.partialorder %v437_v60, 0.0  ;;  %v469_v62 = vmul.f32 32.0, %v437_v60  ;;  %vm461_vm15 = vcmp.ge.f32.partialorder %v445_v61, 0.0  ;;  %v477_v63 = vmul.f32 32.0, %v445_v61 }
 0x108   :  { %v485_v0 = vsel %vm453_vm14, %v437_v60, %v469_v62  ;;  %v493_v1 = vsel %vm461_vm15, %v445_v61, %v477_v63 }
 0x109   :  { %501 = vst [vmem:[%s855_s3 + $0x38] sm:$0xff] %v485_v0  ;;  %509 = vst [vmem:[%s855_s3 + $0x78] sm:$0xff] %v493_v1 }

// kernel: deepspeech_ken_forward.9
= control target key start
LH: loop header
LB: loop body
LE: loop exit
PB: predicated region body
PF: predicated region fallthrough
CT: control target
= control target key end

     0   :  { %s1178_s12 = smov 0   ;;  %s1180_s13 = smov 0   ;;  %s1377_s0 = inlined_call_operand.vmem [shape: bf16[256,128], index: 0, kind: input, shape index: {}]   ;;  %s1378_s1 = inlined_call_operand.vmem [shape: bf16[128,256], index: 1, kind: input, shape index: {}]   ;;  %s1379_s2 = inlined_call_operand.vmem [shape: f32[1,256], index: 2, kind: input, shape index: {}]   ;;  %s1380_s3 = inlined_call_operand.vmem [shape: f32[256,256], index: 3, kind: output, shape index: {}]  }
   0x1   :  { %s1182_s14 = smov 0   ;;  %s1184_s15 = smov 0  }
   0x2   :  { %s1186_s16 = smov 0   ;;  %s1188_s17 = smov 0  }
   0x3   :  { %s1190_s18 = smov 0   ;;  %s1192_s19 = smov 0  }
   0x4   :  { %s1194_s20 = smov 0  }
   0x5 LB: > { %s899_s21 = sadd.s32 4294967295, %s1156_s20   ;;  %s28_s22 = sadd.s32 1, %s1148_s18  ;;  %s1156_s20 = sphi %s1194_s20, %s13_s20   ;;  %s1152_s19 = sphi %s1192_s19, %s1389_s19   ;;  %s1148_s18 = sphi %s1190_s18, %s1388_s18   ;;  %s1144_s17 = sphi %s1188_s17, %s1387_s17   ;;  %s1140_s16 = sphi %s1186_s16, %s1386_s16   ;;  %s1136_s15 = sphi %s1184_s15, %s1385_s15   ;;  %s1132_s14 = sphi %s1182_s14, %s1384_s14   ;;  %s1128_s13 = sphi %s1180_s13, %s1383_s13   ;;  %s1124_s12 = sphi %s1178_s12, %s1382_s12  }
   0x6   : > { %p30_p0 = scmp.ge.s32.totalorder %s28_s22, 2  ;;  %s32_s23 = sadd.s32 1, %s1152_s19 }
   0x7   : > { %s69_s24 = sadd.s32 1, %s1136_s15  ;;  %p76_p1 = scmp.ne.s32.totalorder %s1136_s15, %s1132_s14 }
   0x8   : > { %s1391_s22 = smov (%p30_p0, %s28_s22), 0  ;;  %s1393_s23 = smov (!%p30_p0, %s32_s23), %s1152_s19 }
   0x9   : > { %s65_s25 = ssub.s32 %s1148_s18, %s1391_s22  ;;  %p77_p2 = scmp.eq.s32.totalorder %s1156_s20, 0 }
   0xa   : > { %p34_p3 = scmp.ge.s32.totalorder %s1393_s23, 2  ;;  %p67_p4 = scmp.eq.s32.totalorder %s65_s25, 0 }
   0xb   : > { %p78_p5 = por %p77_p2, %p76_p1  ;;  %s123_s26 = sadd.s32 1, %s1128_s13 }
   0xc   : > { %s1395_s23 = smov (%p34_p3, %s1393_s23), 0  ;;  %p133_p6 = scmp.ne.s32.totalorder %s1128_s13, %s1124_s12 }
   0xd   : > { %s1239_s27 = scalar_select %p67_p4, %s1136_s15, %s69_s24  }
   0xe   : > { %s118_s28 = ssub.s32 %s1152_s19, %s1395_s23  ;;  %p134_p7 = scmp.eq.s32.totalorder %s899_s21, 3 }
   0xf   : > { %s120_s29 = sor.u32 %s118_s28, %s65_s25  ;;  %p902_p10 = scmp.ge.s32.totalorder %s1156_s20, 4 }
  0x10   : > { %p121_p8 = scmp.eq.s32.totalorder %s120_s29, 0  ;;  %p1245_p9 = por %p134_p7, %p133_p6 }
  0x11   : > { %156 = sbr.rel (%p902_p10) target bundleno = 36 (0x24), region = 16 }
  0x12   : > { %s1250_s4 = scalar_select %p121_p8, %s1128_s13, %s123_s26  }
  0x16   : > { %171 = sbr.rel (!%p78_p5) target bundleno = 36 (0x24), region = 24  ;;  %s173_s5 = sand.u32 (%p78_p5), 1, %s1136_s15  }
  0x17   : > { %s904_s6 = sshll.u32 (%p78_p5), %s1148_s18, 2  ;;  %s903_s7 = sshll.u32 (%p78_p5), %s173_s5, 6 }
  0x18   : > { %s1258_s10 = scalar_lea.vmem (%p78_p5), %s1378_s1, %s904_s6  ;;  %s175_s11 = scalar_lea.vmem (%p78_p5), [#allocation3], %s903_s7 }
  0x19   : > { %v197_v0 = vld [vmem:[%s1258_s10] sm:$0xf] (%p78_p5)  ;;  %v199_v1 = vld [vmem:[%s1258_s10 + $0x8] sm:$0xf] (%p78_p5)  ;;  %v201_v2 = vld [vmem:[%s1258_s10 + $0x10] sm:$0xf] (%p78_p5) }
  0x1a   : > { %198 = vst [vmem:[%s175_s11] sm:$0xf] (%p78_p5), %v197_v0  ;;  %200 = vst [vmem:[%s175_s11 + $0x4] sm:$0xf] (%p78_p5), %v199_v1  ;;  %v203_v3 = vld [vmem:[%s1258_s10 + $0x18] sm:$0xf] (%p78_p5) }
  0x1b   : > { %v205_v4 = vld [vmem:[%s1258_s10 + $0x20] sm:$0xf]  ;;  %202 = vst [vmem:[%s175_s11 + $0x8] sm:$0xf] %v201_v2  ;;  %204 = vst [vmem:[%s175_s11 + $0xc] sm:$0xf] %v203_v3 }
  0x1c   : > { %206 = vst [vmem:[%s175_s11 + $0x10] sm:$0xf] %v205_v4  ;;  %v207_v5 = vld [vmem:[%s1258_s10 + $0x28] sm:$0xf]  ;;  %v209_v6 = vld [vmem:[%s1258_s10 + $0x30] sm:$0xf] }
  0x1d   : > { %v211_v7 = vld [vmem:[%s1258_s10 + $0x38] sm:$0xf]  ;;  %208 = vst [vmem:[%s175_s11 + $0x14] sm:$0xf] %v207_v5  ;;  %210 = vst [vmem:[%s175_s11 + $0x18] sm:$0xf] %v209_v6 }
  0x1e   : > { %212 = vst [vmem:[%s175_s11 + $0x1c] sm:$0xf] %v211_v7  ;;  %v213_v8 = vld [vmem:[%s1258_s10 + $0x40] sm:$0xf]  ;;  %v215_v9 = vld [vmem:[%s1258_s10 + $0x48] sm:$0xf] }
  0x1f   : > { %v217_v10 = vld [vmem:[%s1258_s10 + $0x50] sm:$0xf]  ;;  %214 = vst [vmem:[%s175_s11 + $0x20] sm:$0xf] %v213_v8  ;;  %216 = vst [vmem:[%s175_s11 + $0x24] sm:$0xf] %v215_v9 }
  0x20   : > { %218 = vst [vmem:[%s175_s11 + $0x28] sm:$0xf] %v217_v10  ;;  %v219_v11 = vld [vmem:[%s1258_s10 + $0x58] sm:$0xf]  ;;  %v221_v12 = vld [vmem:[%s1258_s10 + $0x60] sm:$0xf] }
  0x21   : > { %v223_v13 = vld [vmem:[%s1258_s10 + $0x68] sm:$0xf]  ;;  %220 = vst [vmem:[%s175_s11 + $0x2c] sm:$0xf] %v219_v11  ;;  %222 = vst [vmem:[%s175_s11 + $0x30] sm:$0xf] %v221_v12 }
  0x22   : > { %224 = vst [vmem:[%s175_s11 + $0x34] sm:$0xf] %v223_v13  ;;  %v225_v14 = vld [vmem:[%s1258_s10 + $0x70] sm:$0xf]  ;;  %v227_v15 = vld [vmem:[%s1258_s10 + $0x78] sm:$0xf] }
  0x23   : > { %226 = vst [vmem:[%s175_s11 + $0x38] sm:$0xf] %v225_v14  ;;  %228 = vst [vmem:[%s175_s11 + $0x3c] sm:$0xf] %v227_v15 }
  0x24 PF: > { %p905_p11 = scmp.ge.s32.totalorder %s1156_s20, 1  ;;  %p289_p12 = scmp.lt.s32.totalorder %s1156_s20, 5 }
  0x26   : > { %p290_p13 = pnand %p905_p11, %p289_p12 }
  0x27   : > { %s296_s21 = sand.u32 (!%p290_p13), 1, %s1132_s14   ;;  %s908_s24 = sshll.u32 (!%p290_p13), %s1144_s17, 4 }
  0x28   : > { %293 = sbr.rel (%p290_p13) target bundleno = 297 (0x129), region = 69  ;;  %s906_s25 = sshll.u32 (!%p290_p13), %s296_s21, 6 }
  0x29   : > { %p330_p0 = scmp.lt.s32.totalorder (!%p290_p13), %s908_s24, 31  ;;  %s1280_s26 = scalar_lea.vmem (!%p290_p13), [#allocation3], %s906_s25 }
  0x2a   : > { %p339_p1 = scmp.lt.s32.totalorder (!%p290_p13), %s1140_s16, 1  ;;  %s326_s7 = sand.u32 (!%p290_p13), 1, %s1124_s12  }
  0x2b   : > { %s907_s11 = sshll.u32 (!%p290_p13), %s326_s7, 7 }
  0x2c   : > { %s1309_s21 = scalar_lea.vmem (!%p290_p13), [#allocation4], %s907_s11 }
  0x2d   : > { %v1070_v16 = vld [vmem:[%s1280_s26 + $0x38] sm:$0xff]   ;;  %s1397_s24 = smov (!%p330_p0, %s908_s24), 31  ;;  %v1071_v17 = vld [vmem:[%s1280_s26 + $0x30] sm:$0xff]   ;;  %v1072_v18 = vld [vmem:[%s1280_s26 + $0x28] sm:$0xff]   ;;  %s933_s12 = sshll.u32 (%p1245_p9), %s1144_s17, 5 }
  0x2e   : > { %950 = vmatprep.subr.bf16.mxu0 %v1070_v16  ;;  %982 = vmatprep.subr.bf16.mxu1 %v1070_v16  ;;  %s909_s28 = sshll.u32 %s1397_s24, 2  ;;  %v1073_v19 = vld [vmem:[%s1280_s26 + $0x20] sm:$0xff]   ;;  %v1074_v22 = vld [vmem:[%s1280_s26 + $0x18] sm:$0xff]   ;;  %v1075_v23 = vld [vmem:[%s1280_s26 + $0x10] sm:$0xff]   ;;  %s704_s30 = sadd.s32 (%p1245_p9), %s1140_s16, %s933_s12 }
  0x2f   : > { %951 = vmatpush3.bf16.msra.mxu0 %v1070_v16  ;;  %990 = vmatpush3.bf16.msra.mxu1 %v1070_v16  ;;  %s1288_s5 = scalar_lea.vmem %s1377_s0, %s909_s28  ;;  %v1076_v24 = vld [vmem:[%s1280_s26 + $0x8] sm:$0xff]   ;;  %v1077_v25 = vld [vmem:[%s1280_s26] sm:$0xff]   ;;  %s930_s24 = sshll.u32 (%p1245_p9), %s704_s30, 3 }
  0x30   : > { %952 = vmatprep.subr.bf16.mxu0 %v1071_v17  ;;  %983 = vmatprep.subr.bf16.mxu1 %v1071_v17  ;;  %v1078_v20 = vld [vmem:[%s1288_s5] sm:$0xff]   ;;  %v1080_v26 = vld [vmem:[%s1288_s5 + $0x8] sm:$0xff]   ;;  %v1082_v28 = vld [vmem:[%s1288_s5 + $0x10] sm:$0xff]   ;;  %s340_s6 = scalar_select %p339_p1, %s1140_s16, 1 }
  0x31   : > { %v1079_v21 = vld [vmem:[%s1288_s5 + $0x20] sm:$0xff]   ;;  %966 = vmatprep.mubr.bf16.mxu0 %v1078_v20  ;;  %v1081_v27 = vld [vmem:[%s1288_s5 + $0x28] sm:$0xff]   ;;  %v1083_v29 = vld [vmem:[%s1288_s5 + $0x30] sm:$0xff]   ;;  %s706_s28 = scalar_lea.vmem (%p1245_p9), %s1380_s3, %s930_s24 }
  0x32   : > { %974 = vmatprep.mubr.bf16.mxu1 %v1079_v21  ;;  %v1084_v30 = vld [vmem:[%s1288_s5 + $0x18] sm:$0xff]   ;;  %s341_s10 = scalar_lea.vmem %s1379_s2, %s340_s6 }
  0x33   : > { %953 = vmatpush3.bf16.msra.mxu0 %v1071_v17  ;;  %991 = vmatpush3.bf16.msra.mxu1 %v1071_v17  ;;  %v1085_v31 = vld [vmem:[%s1288_s5 + $0x38] sm:$0xff]   ;;  %v926_v32 = vld [vmem:[%s341_s10] ss:$0 sm:$0xff] }
  0x34   : > { %954 = vmatprep.subr.bf16.mxu0 %v1072_v18  ;;  %984 = vmatprep.subr.bf16.mxu1 %v1072_v18 }
  0x37   : > { %955 = vmatpush3.bf16.msra.mxu0 %v1072_v18  ;;  %992 = vmatpush3.bf16.msra.mxu1 %v1072_v18 }
  0x38   : > { %956 = vmatprep.subr.bf16.mxu0 %v1073_v19  ;;  %985 = vmatprep.subr.bf16.mxu1 %v1073_v19 }
  0x3b   : > { %957 = vmatpush3.bf16.msra.mxu0 %v1073_v19  ;;  %993 = vmatpush3.bf16.msra.mxu1 %v1073_v19 }
  0x3c   : > { %958 = vmatprep.subr.bf16.mxu0 %v1074_v22  ;;  %986 = vmatprep.subr.bf16.mxu1 %v1074_v22 }
  0x3f   : > { %959 = vmatpush3.bf16.msra.mxu0 %v1074_v22  ;;  %994 = vmatpush3.bf16.msra.mxu1 %v1074_v22 }
  0x40   : > { %960 = vmatprep.subr.bf16.mxu0 %v1075_v23  ;;  %987 = vmatprep.subr.bf16.mxu1 %v1075_v23 }
  0x43   : > { %961 = vmatpush3.bf16.msra.mxu0 %v1075_v23  ;;  %995 = vmatpush3.bf16.msra.mxu1 %v1075_v23 }
  0x44   : > { %962 = vmatprep.subr.bf16.mxu0 %v1076_v24  ;;  %988 = vmatprep.subr.bf16.mxu1 %v1076_v24 }
  0x47   : > { %963 = vmatpush3.bf16.msra.mxu0 %v1076_v24  ;;  %996 = vmatpush3.bf16.msra.mxu1 %v1076_v24 }
  0x48   : > { %964 = vmatprep.subr.bf16.mxu0 %v1077_v25  ;;  %989 = vmatprep.subr.bf16.mxu1 %v1077_v25 }
  0x4b   : > { %965 = vmatpush3.bf16.msra.mxu0 %v1077_v25  ;;  %997 = vmatpush3.bf16.msra.mxu1 %v1077_v25 }
  0x4e   : > { %967 = vmatmul.mubr.bf16.vlgmr.msra.gmra.mxu0 %v1080_v26  ;;  %975 = vmatmul.mubr.bf16.vlgmr.msra.gmra.mxu1 %v1081_v27 }
  0x4f   : > { %970 = vmatprep.mubr.bf16.mxu0 %v1082_v28  ;;  %978 = vmatprep.mubr.bf16.mxu1 %v1083_v29 }
  0x56   : > { %971 = vmatmul.mubr.bf16.gmra.mxu0 %v1084_v30  ;;  %979 = vmatmul.mubr.bf16.gmra.mxu1 %v1085_v31 }
 0x10e   : > { %v968_v33 = vpop.f32.mrf.mxu0  ;;  %v976_v34 = vpop.f32.mrf.mxu1 }
 0x10f   : > { %v665_v35 = vadd.f32 %v968_v33, %v926_v32  ;;  %v673_v36 = vadd.f32 %v976_v34, %v926_v32 }
 0x110   : > { %v542_v37 = vpop.f32.mrf.mxu0  ;;  %v574_v38 = vpop.f32.mrf.mxu1 }
 0x111   : > { %681 = vst [vmem:[%s1309_s21 + $0x10] sm:$0xff] %v665_v35  ;;  %689 = vst [vmem:[%s1309_s21 + $0x50] sm:$0xff] %v673_v36  ;;  %v663_v39 = vadd.f32 %v926_v32, %v542_v37  ;;  %v671_v40 = vadd.f32 %v926_v32, %v574_v38 }
 0x112   : > { %v969_v41 = vpop.f32.mrf.mxu0  ;;  %v977_v42 = vpop.f32.mrf.mxu1 }
 0x113   : > { %679 = vst [vmem:[%s1309_s21] sm:$0xff] %v663_v39  ;;  %687 = vst [vmem:[%s1309_s21 + $0x40] sm:$0xff] %v671_v40  ;;  %v666_v43 = vadd.f32 %v969_v41, %v926_v32  ;;  %v674_v44 = vadd.f32 %v977_v42, %v926_v32 }
 0x114   : > { %v545_v45 = vpop.f32.mrf.mxu0  ;;  %v577_v46 = vpop.f32.mrf.mxu1 }
 0x115   : > { %682 = vst [vmem:[%s1309_s21 + $0x18] sm:$0xff] %v666_v43  ;;  %690 = vst [vmem:[%s1309_s21 + $0x58] sm:$0xff] %v674_v44  ;;  %v664_v47 = vadd.f32 %v926_v32, %v545_v45  ;;  %v672_v48 = vadd.f32 %v926_v32, %v577_v46 }
 0x116   : > { %v972_v49 = vpop.f32.mrf.mxu0  ;;  %v980_v50 = vpop.f32.mrf.mxu1 }
 0x117   : > { %680 = vst [vmem:[%s1309_s21 + $0x8] sm:$0xff] %v664_v47  ;;  %688 = vst [vmem:[%s1309_s21 + $0x48] sm:$0xff] %v672_v48  ;;  %v669_v51 = vadd.f32 %v972_v49, %v926_v32  ;;  %v677_v52 = vadd.f32 %v980_v50, %v926_v32 }
 0x118   : > { %v558_v53 = vpop.f32.mrf.mxu0  ;;  %v590_v54 = vpop.f32.mrf.mxu1  ;;  %v769_v3 = vld [vmem:[%s1309_s21 + $0x10] sm:$0xff] (%p1245_p9) }
 0x119   : > { %685 = vst [vmem:[%s1309_s21 + $0x30] sm:$0xff] %v669_v51  ;;  %693 = vst [vmem:[%s1309_s21 + $0x70] sm:$0xff] %v677_v52  ;;  %v667_v55 = vadd.f32 %v926_v32, %v558_v53  ;;  %v675_v56 = vadd.f32 %v926_v32, %v590_v54  ;;  %v785_v11 = vld [vmem:[%s1309_s21 + $0x50] sm:$0xff] (%p1245_p9) }
 0x11a   : > { %v973_v57 = vpop.f32.mrf.mxu0  ;;  %v981_v58 = vpop.f32.mrf.mxu1  ;;  %v765_v1 = vld [vmem:[%s1309_s21] sm:$0xff] (%p1245_p9)  ;;  %770 = vst [vmem:[%s706_s28 + $0x20] sm:$0xff] (%p1245_p9), %v769_v3  ;;  %786 = vst [vmem:[%s706_s28 + $0xa0] sm:$0xff] (%p1245_p9), %v785_v11 }
 0x11b   : > { %683 = vst [vmem:[%s1309_s21 + $0x20] sm:$0xff] %v667_v55  ;;  %691 = vst [vmem:[%s1309_s21 + $0x60] sm:$0xff] %v675_v56  ;;  %v670_v59 = vadd.f32 %v973_v57, %v926_v32  ;;  %v678_v60 = vadd.f32 %v981_v58, %v926_v32  ;;  %701 = sbr.rel (!%p1245_p9) target bundleno = 297 (0x129), region = 85  ;;  %v781_v9 = vld [vmem:[%s1309_s21 + $0x40] sm:$0xff] (%p1245_p9) }
 0x11c   : > { %v561_v61 = vpop.f32.mrf.mxu0  ;;  %v593_v62 = vpop.f32.mrf.mxu1  ;;  %v771_v4 = vld [vmem:[%s1309_s21 + $0x18] sm:$0xff] (%p1245_p9)  ;;  %766 = vst [vmem:[%s706_s28] sm:$0xff] (%p1245_p9), %v765_v1  ;;  %782 = vst [vmem:[%s706_s28 + $0x80] sm:$0xff] (%p1245_p9), %v781_v9 }
 0x11d   : > { %686 = vst [vmem:[%s1309_s21 + $0x38] sm:$0xff] %v670_v59  ;;  %694 = vst [vmem:[%s1309_s21 + $0x78] sm:$0xff] %v678_v60  ;;  %v668_v63 = vadd.f32 %v926_v32, %v561_v61  ;;  %v676_v0 = vadd.f32 %v926_v32, %v593_v62  ;;  %v787_v12 = vld [vmem:[%s1309_s21 + $0x58] sm:$0xff] (%p1245_p9) }
 0x11e   : > { %v767_v2 = vld [vmem:[%s1309_s21 + $0x8] sm:$0xff] (%p1245_p9)  ;;  %772 = vst [vmem:[%s706_s28 + $0x30] sm:$0xff] (%p1245_p9), %v771_v4  ;;  %788 = vst [vmem:[%s706_s28 + $0xb0] sm:$0xff] (%p1245_p9), %v787_v12 }
 0x11f   : > { %684 = vst [vmem:[%s1309_s21 + $0x28] sm:$0xff] %v668_v63  ;;  %692 = vst [vmem:[%s1309_s21 + $0x68] sm:$0xff] %v676_v0  ;;  %v783_v10 = vld [vmem:[%s1309_s21 + $0x48] sm:$0xff] (%p1245_p9) }
 0x120   : > { %v777_v7 = vld [vmem:[%s1309_s21 + $0x30] sm:$0xff]  ;;  %768 = vst [vmem:[%s706_s28 + $0x10] sm:$0xff] %v767_v2  ;;  %784 = vst [vmem:[%s706_s28 + $0x90] sm:$0xff] %v783_v10 }
 0x121   : > { %778 = vst [vmem:[%s706_s28 + $0x60] sm:$0xff] %v777_v7  ;;  %v793_v15 = vld [vmem:[%s1309_s21 + $0x70] sm:$0xff] }
 0x122   : > { %v773_v5 = vld [vmem:[%s1309_s21 + $0x20] sm:$0xff]  ;;  %794 = vst [vmem:[%s706_s28 + $0xe0] sm:$0xff] %v793_v15 }
 0x123   : > { %774 = vst [vmem:[%s706_s28 + $0x40] sm:$0xff] %v773_v5  ;;  %v789_v13 = vld [vmem:[%s1309_s21 + $0x60] sm:$0xff] }
 0x124   : > { %v779_v8 = vld [vmem:[%s1309_s21 + $0x38] sm:$0xff]  ;;  %790 = vst [vmem:[%s706_s28 + $0xc0] sm:$0xff] %v789_v13 }
 0x125   : > { %780 = vst [vmem:[%s706_s28 + $0x70] sm:$0xff] %v779_v8  ;;  %v795_v16 = vld [vmem:[%s1309_s21 + $0x78] sm:$0xff] }
 0x126   : > { %v775_v6 = vld [vmem:[%s1309_s21 + $0x28] sm:$0xff]  ;;  %796 = vst [vmem:[%s706_s28 + $0xf0] sm:$0xff] %v795_v16 }
 0x127   : > { %776 = vst [vmem:[%s706_s28 + $0x50] sm:$0xff] %v775_v6  ;;  %v791_v14 = vld [vmem:[%s1309_s21 + $0x68] sm:$0xff] }
 0x128   : > { %792 = vst [vmem:[%s706_s28 + $0xd0] sm:$0xff] %v791_v14 }
 0x129 PF: > { %s13_s20 = sadd.s32 1, %s1156_s20   ;;  %s1382_s12 = smov %s1128_s13 }
 0x12a   : > { %p10_p2 = scmp.ge.s32.totalorder %s13_s20, 6   ;;  %s1383_s13 = smov %s1250_s4 }
 0x12b   : > { %s1384_s14 = smov %s1136_s15  ;;  %s1385_s15 = smov %s1239_s27 }
 0x12c   : > { %s1386_s16 = smov %s1148_s18  ;;  %s1387_s17 = smov %s1152_s19 }
 0x12d   : > { %s1388_s18 = smov %s1391_s22  ;;  %s1389_s19 = smov %s1395_s23 }
 0x12e   :  { %12 = sbr.rel (!%p10_p2) target bundleno = 5 (0x5), region = 160 }

// kernel: deepspeech_ken_forward.10
= control target key start
LH: loop header
LB: loop body
LE: loop exit
PB: predicated region body
PF: predicated region fallthrough
CT: control target
= control target key end

     0   :  { %s646_s15 = smov 0   ;;  %s721_s0 = inlined_call_operand.vmem [shape: f32[26,8,256], index: 0, kind: input, shape index: {}, may-alias: {0,1}]   ;;  %s722_s1 = inlined_call_operand.vmem [shape: f32[26,8,256], index: 1, kind: input, shape index: {}, may-alias: {0,1}]   ;;  %s723_s2 = inlined_call_operand.vmem [shape: bf16[64,256], index: 2, kind: input, shape index: {}]   ;;  %s724_s3 = inlined_call_operand.vmem [shape: f32[26,8,32], index: 3, kind: output, shape index: {0}]   ;;  %s725_s4 = inlined_call_operand.vmem [shape: f32[26,8,32], index: 4, kind: output, shape index: {1}]  }
   0x1 LB: > { %s541_s16 = sadd.s32 4294967295, %s614_s15   ;;  %p545_p0 = scmp.ge.s32.totalorder %s614_s15, 1  ;;  %s614_s15 = sphi %s646_s15, %s15_s15  }
   0x2   : > { %p182_p1 = scmp.lt.s32.totalorder %s614_s15, 27 }
   0x4   : > { %p183_p2 = pnand %p545_p0, %p182_p1 }
   0x5   : > { %p219_p3 = scmp.lt.s32.totalorder (!%p183_p2), %s541_s16, 25  ;;  %s224_s17 = ssub.s32 (!%p183_p2), 25, %s541_s16 }
   0x6   : > { %186 = sbr.rel (%p183_p2) target bundleno = 736 (0x2e0), region = 32  ;;  %p225_p4 = scmp.lt.s32.totalorder (!%p183_p2), %s224_s17, 25 }
   0x7   : > { %p552_p5 = scmp.ne.s32.totalorder (!%p183_p2), %s541_s16, 0 }
   0xb   : > { %s220_s18 = scalar_select %p219_p3, %s541_s16, 25 }
   0xc   : > { %s727_s17 = smov (!%p225_p4, %s224_s17), 25 }
   0xd   : > { %s565_s19 = sshll.u32 %s220_s18, 4  ;;  %s550_s20 = sshll.u32 %s220_s18, 3 }
   0xe   : > { %s657_s23 = scalar_lea.vmem %s721_s0, %s565_s19  ;;  %s566_s24 = sshll.u32 %s727_s17, 4 }
   0xf   : > { %s662_s27 = scalar_lea.vmem %s722_s1, %s566_s24  ;;  %s667_s30 = scalar_lea.vmem %s724_s3, %s550_s20 }
  0x10   : > { %s551_s5 = sshll.u32 %s727_s17, 3  ;;  %246 = sbr.rel (%p552_p5) target bundleno = 24 (0x18), region = 36 }
  0x11   : > { %s672_s8 = scalar_lea.vmem %s725_s4, %s551_s5 }
  0x15   : > { %vm247_vm0 = vcmask 523264   ;;  %vm249_vm1 = vcmask 261120   ;;  %v616_v0 = vmov 0.0  }
  0x16   : > { %248 = vst.msk [vmem:[#allocation2] sm:$0xff] %vm247_vm0, %v616_v0 }
  0x17   : > { %250 = vst.msk [vmem:[#allocation3] sm:$0xff] %vm249_vm1, %v616_v0  ;;  %251 = vst.msk [vmem:[#allocation4] sm:$0xff] %vm249_vm1, %v616_v0 }
  0x18 PF: > { %v580_v1 = vld [vmem:[%s723_s2 + $0x34] ss:$8 sps:$4 sm:$0xff]   ;;  %v582_v2 = vld [vmem:[%s723_s2 + $0x30] ss:$8 sps:$4 sm:$0xff]   ;;  %v617_v3 = vmov 0   ;;  %s618_s20 = smov 32  }
  0x19   : > { %338 = vmatprep.mubr.bf16.mxu0 %v617_v3  ;;  %314 = vmatprep.subr.bf16.mxu0 %v580_v1  ;;  %v583_v4 = vld [vmem:[%s723_s2 + $0x24] ss:$8 sps:$4 sm:$0xff]   ;;  %v585_v5 = vld [vmem:[%s723_s2 + $0x20] ss:$8 sps:$4 sm:$0xff]   ;;  %v586_v6 = vld [vmem:[%s723_s2 + $0x14] ss:$8 sps:$4 sm:$0xff]  }
  0x1a   : > { %315 = vmatpush1.bf16.msra.mxu0 %v582_v2  ;;  %v588_v8 = vld [vmem:[%s723_s2 + $0x10] ss:$8 sps:$4 sm:$0xff]   ;;  %v589_v10 = vld [vmem:[%s723_s2 + $0x4] ss:$8 sps:$4 sm:$0xff]   ;;  %v591_v11 = vld [vmem:[%s723_s2] ss:$8 sps:$4 sm:$0xff]  }
  0x1b   : > { %316 = vmatprep.subr.bf16.mxu0 %v583_v4  ;;  %vm302_vm2 = vcmask 523264   ;;  %v347_v14 = vld [vmem:[%s657_s23] sm:$0xff]  ;;  %v562_v16 = vld [vmem:[%s662_s27 + $0x8] sm:$0xff]  ;;  %s619_s29 = smov 64   ;;  %s620_s23 = smov 96   ;;  %vm413_vm3 = vcmask 261120  }
  0x1c   : > { %vm429_vm4 = vcmask 523520  }
  0x1d   : > { %v252_v12 = vld [vmem:[#allocation2] sm:$0xff] }
  0x1e   : > { %v351_v7 = vld [vmem:[#allocation3] sm:$0xff]  ;;  %317 = vmatpush1.bf16.msra.mxu0 %v585_v5  ;;  %v380_v9 = vld [vmem:[#allocation4] sm:$0xff]  ;;  %v253_v13 = vpack.c.bf16 %v252_v12, %v252_v12 }
  0x1f   : > { %360 = vrot.lane.b32.xlu1 %v351_v7, %s618_s20  ;;  %318 = vmatprep.subr.bf16.mxu0 %v586_v6 }
  0x22   : > { %319 = vmatpush1.bf16.msra.mxu0 %v588_v8 }
  0x23   : > { %389 = vrot.lane.b32.xlu1 %v380_v9, %s618_s20  ;;  %320 = vmatprep.subr.bf16.mxu0 %v589_v10 }
  0x26   : > { %321 = vmatpush1.bf16.msra.mxu0 %v591_v11 }
  0x29   : > { %561 = vmatmul.mubr.msk.bf16.vlgmr.msra.gmra.mxu0 %vm302_vm2, %v253_v13 }
  0x91   : > { %v361_v38 = vpop.permute.xlu1 %360 }
  0x95   : > { %v390_v40 = vpop.permute.xlu1 %389 }
  0xe9   : > { %v340_v15 = vpop.f32.mrf.mxu0 }
  0xea   : > { %v348_v17 = vadd.f32 %v347_v14, %v340_v15 }
  0xeb   : > { %v342_v18 = vpop.f32.mrf.mxu0 }
  0xec   : > { %592 = vtanh.f32 %v348_v17  ;;  %v350_v19 = vadd.f32 %v562_v16, %v342_v18  ;;  %v352_v24 = vsub.f32 0.0, %v348_v17 }
  0xed   : > { %v344_v20 = vpop.f32.mrf.mxu0 }
  0xee   : > { %594 = vtanh.f32 %v350_v19  ;;  %v353_v25 = vmul.f32 1.442695, %v352_v24  ;;  %v381_v26 = vsub.f32 0.0, %v350_v19 }
  0xef   : > { %v345_v21 = vpop.f32.mrf.mxu0 }
  0xf0   : > { %596 = vpow2.f32 %v353_v25  ;;  %v382_v27 = vmul.f32 1.442695, %v381_v26 }
  0xf2   : > { %598 = vpow2.f32 %v382_v27 }
  0xf9   : > { %v593_v22 = vpop.eup %592 }
  0xfa   : > { %365 = vrot.lane.b32.xlu0 %v593_v22, %s619_s29 }
  0xfb   : > { %v595_v23 = vpop.eup %594 }
  0xfd   : > { %v597_v28 = vpop.eup %596 }
  0xfe   : > { %394 = vrot.lane.b32.xlu0 %v595_v23, %s619_s29  ;;  %v355_v29 = vadd.f32 1.0, %v597_v28 }
  0xff   : > { %v599_v30 = vpop.eup %598 }
 0x100   : > { %600 = vrcp.f32 %v355_v29  ;;  %v384_v31 = vadd.f32 1.0, %v599_v30 }
 0x102   : > { %602 = vrcp.f32 %v384_v31 }
 0x10d   : > { %v601_v32 = vpop.eup %600 }
 0x10e   : > { %v363_v39 = vmul.f32 %v601_v32, %v361_v38 }
 0x10f   : > { %v603_v35 = vpop.eup %602 }
 0x110   : > { %v392_v43 = vmul.f32 %v603_v35, %v390_v40 }
 0x16c   : > { %v366_v33 = vpop.permute.xlu0 %365 }
 0x16d   : > { %v368_v34 = vmul.f32 %v601_v32, %v366_v33 }
 0x16f   : > { %370 = vrot.lane.b32.xlu0 %v368_v34, %s618_s20 }
 0x170   : > { %v395_v36 = vpop.permute.xlu0 %394 }
 0x171   : > { %v397_v37 = vmul.f32 %v603_v35, %v395_v36 }
 0x173   : > { %399 = vrot.lane.b32.xlu1 %v397_v37, %s618_s20 }
 0x1e1   : > { %v371_v41 = vpop.permute.xlu0 %370 }
 0x1e2   : > { %v373_v42 = vadd.f32 %v371_v41, %v363_v39 }
 0x1e4   : > { %604 = vtanh.f32 %v373_v42 }
 0x1e5   : > { %v400_v44 = vpop.permute.xlu1 %399 }
 0x1e6   : > { %v402_v45 = vadd.f32 %v400_v44, %v392_v43 }
 0x1e8   : > { %606 = vtanh.f32 %v402_v45 }
 0x1f1   : > { %v605_v46 = vpop.eup %604 }
 0x1f2   : > { %376 = vrot.lane.b32.xlu0 %v605_v46, %s619_s29 }
 0x1f5   : > { %v607_v47 = vpop.eup %606 }
 0x1f6   : > { %416 = vrot.lane.b32.xlu0 %v402_v45, %s620_s23  ;;  %405 = vrot.lane.b32.xlu1 %v607_v47, %s619_s29 }
 0x1fa   : > { %410 = vrot.lane.b32.xlu1 %v373_v42, %s620_s23 }
 0x264   : > { %v377_v48 = vpop.permute.xlu0 %376 }
 0x265   : > { %v379_v49 = vmul.f32 %v601_v32, %v377_v48 }
 0x267   : > { %421 = vrot.lane.b32.xlu0 %v379_v49, %s618_s20 }
 0x268   : > { %v417_v50 = vpop.permute.xlu0 %416  ;;  %v406_v51 = vpop.permute.xlu1 %405 }
 0x269   : > { %419 = vst.msk [vmem:[#allocation4] sm:$0xff] %vm413_vm3, %v417_v50  ;;  %v408_v52 = vmul.f32 %v603_v35, %v406_v51 }
 0x26b   : > { %432 = vrot.lane.b32.xlu0 %v408_v52, %s618_s20  ;;  %426 = vrot.lane.b32.xlu1 %v408_v52, %s619_s29 }
 0x26c   : > { %v411_v53 = vpop.permute.xlu1 %410 }
 0x26d   : > { %414 = vst.msk [vmem:[#allocation3] sm:$0xff] %vm413_vm3, %v411_v53 }
 0x2d9   : > { %v422_v54 = vpop.permute.xlu0 %421 }
 0x2da   : > { %424 = vst.msk [vmem:[#allocation2] sm:$0xff] %vm413_vm3, %v422_v54  ;;  %431 = vst.msk [vmem:[%s667_s30] sm:$0xff] %vm413_vm3, %v422_v54 }
 0x2dd   : > { %v433_v55 = vpop.permute.xlu0 %432  ;;  %v427_v56 = vpop.permute.xlu1 %426 }
 0x2de   : > { %435 = vst.msk [vmem:[%s672_s8] sm:$0xff] %vm413_vm3, %v433_v55 }
 0x2df   : > { %430 = vst.msk [vmem:[#allocation2] sm:$0xff] %vm429_vm4, %v427_v56 }
 0x2e0 PF: > { %s15_s15 = sadd.s32 1, %s614_s15  }
 0x2e1   : > { %p12_p6 = scmp.ge.s32.totalorder %s15_s15, 28  }
 0x2e3   :  { %14 = sbr.rel (!%p12_p6) target bundleno = 1 (0x1), region = 81 }

// kernel: deepspeech_ken_forward.13
= control target key start
LH: loop header
LB: loop body
LE: loop exit
PB: predicated region body
PF: predicated region fallthrough
CT: control target
= control target key end

     0   :  { %s1108_s12 = smov 0   ;;  %s1110_s13 = smov 0   ;;  %s1288_s0 = inlined_call_operand.vmem [shape: bf16[256,128], index: 0, kind: input, shape index: {}]   ;;  %s1289_s1 = inlined_call_operand.vmem [shape: bf16[128,128], index: 1, kind: input, shape index: {}]   ;;  %s1290_s2 = inlined_call_operand.vmem [shape: f32[1,128], index: 2, kind: input, shape index: {}]   ;;  %s1291_s3 = inlined_call_operand.vmem [shape: f32[256,128], index: 3, kind: output, shape index: {}]  }
   0x1   :  { %s1112_s14 = smov 0  }
   0x2 LB: > { %s32_s15 = sadd.s32 1, %s1082_s13  ;;  %p872_p0 = scmp.ge.s32.totalorder %s1086_s14, 1  ;;  %s1086_s14 = sphi %s1112_s14, %s13_s14   ;;  %s1082_s13 = sphi %s1110_s13, %s1293_s13   ;;  %s1078_s12 = sphi %s1108_s12, %s1292_s12  }
   0x3   : > { %p34_p1 = scmp.ge.s32.totalorder %s32_s15, 2  ;;  %p188_p2 = scmp.lt.s32.totalorder %s1086_s14, 3 }
   0x5   : > { %s1295_s15 = smov (%p34_p1, %s32_s15), 0  ;;  %p189_p3 = pnand %p872_p0, %p188_p2 }
   0x6   : > { %s873_s18 = sshll.u32 (!%p189_p3), %s1078_s12, 4 }
   0x7   : > { %192 = sbr.rel (%p189_p3) target bundleno = 584 (0x248), region = 32  ;;  %p230_p4 = scmp.lt.s32.totalorder (!%p189_p3), %s873_s18, 31 }
   0xc   : > { %v984_v0 = vld [vmem:[%s1289_s1 + $0x38] sm:$0xff]   ;;  %v985_v1 = vld [vmem:[%s1289_s1 + $0x30] sm:$0xff]   ;;  %s1297_s18 = smov (!%p230_p4, %s873_s18), 31  ;;  %v986_v2 = vld [vmem:[%s1289_s1 + $0x28] sm:$0xff]  }
   0xd   : > { %912 = vmatprep.subr.bf16.mxu0 %v984_v0  ;;  %944 = vmatprep.subr.bf16.mxu1 %v984_v0  ;;  %s874_s23 = sshll.u32 %s1297_s18, 2  ;;  %v987_v3 = vld [vmem:[%s1289_s1 + $0x20] sm:$0xff]   ;;  %v988_v6 = vld [vmem:[%s1289_s1 + $0x18] sm:$0xff]   ;;  %v989_v7 = vld [vmem:[%s1289_s1 + $0x10] sm:$0xff]   ;;  %s876_s12 = sshll.u32 %s1297_s18, 3 }
   0xe   : > { %913 = vmatpush3.bf16.msra.mxu0 %v984_v0  ;;  %952 = vmatpush3.bf16.msra.mxu1 %v984_v0  ;;  %s1141_s26 = scalar_lea.vmem %s1288_s0, %s874_s23  ;;  %v990_v8 = vld [vmem:[%s1289_s1 + $0x8] sm:$0xff]   ;;  %v991_v9 = vld [vmem:[%s1289_s1] sm:$0xff]   ;;  %s1245_s19 = scalar_lea.vmem %s1291_s3, %s876_s12 }
   0xf   : > { %914 = vmatprep.subr.bf16.mxu0 %v985_v1  ;;  %945 = vmatprep.subr.bf16.mxu1 %v985_v1  ;;  %v992_v4 = vld [vmem:[%s1141_s26] sm:$0xff]   ;;  %v994_v10 = vld [vmem:[%s1141_s26 + $0x8] sm:$0xff]   ;;  %v996_v12 = vld [vmem:[%s1141_s26 + $0x10] sm:$0xff]  }
  0x10   : > { %v993_v5 = vld [vmem:[%s1141_s26 + $0x20] sm:$0xff]   ;;  %928 = vmatprep.mubr.bf16.mxu0 %v992_v4  ;;  %v995_v11 = vld [vmem:[%s1141_s26 + $0x28] sm:$0xff]   ;;  %v998_v13 = vld [vmem:[%s1141_s26 + $0x30] sm:$0xff]  }
  0x11   : > { %936 = vmatprep.mubr.bf16.mxu1 %v993_v5  ;;  %v997_v14 = vld [vmem:[%s1141_s26 + $0x18] sm:$0xff]   ;;  %v893_v16 = vld [vmem:[%s1290_s2] ss:$0 sm:$0xff] }
  0x12   : > { %915 = vmatpush3.bf16.msra.mxu0 %v985_v1  ;;  %953 = vmatpush3.bf16.msra.mxu1 %v985_v1  ;;  %v999_v15 = vld [vmem:[%s1141_s26 + $0x38] sm:$0xff]  }
  0x13   : > { %916 = vmatprep.subr.bf16.mxu0 %v986_v2  ;;  %946 = vmatprep.subr.bf16.mxu1 %v986_v2 }
  0x16   : > { %917 = vmatpush3.bf16.msra.mxu0 %v986_v2  ;;  %954 = vmatpush3.bf16.msra.mxu1 %v986_v2 }
  0x17   : > { %918 = vmatprep.subr.bf16.mxu0 %v987_v3  ;;  %947 = vmatprep.subr.bf16.mxu1 %v987_v3 }
  0x1a   : > { %919 = vmatpush3.bf16.msra.mxu0 %v987_v3  ;;  %955 = vmatpush3.bf16.msra.mxu1 %v987_v3 }
  0x1b   : > { %920 = vmatprep.subr.bf16.mxu0 %v988_v6  ;;  %948 = vmatprep.subr.bf16.mxu1 %v988_v6 }
  0x1e   : > { %921 = vmatpush3.bf16.msra.mxu0 %v988_v6  ;;  %956 = vmatpush3.bf16.msra.mxu1 %v988_v6 }
  0x1f   : > { %922 = vmatprep.subr.bf16.mxu0 %v989_v7  ;;  %949 = vmatprep.subr.bf16.mxu1 %v989_v7 }
  0x22   : > { %923 = vmatpush3.bf16.msra.mxu0 %v989_v7  ;;  %957 = vmatpush3.bf16.msra.mxu1 %v989_v7 }
  0x23   : > { %924 = vmatprep.subr.bf16.mxu0 %v990_v8  ;;  %950 = vmatprep.subr.bf16.mxu1 %v990_v8 }
  0x26   : > { %925 = vmatpush3.bf16.msra.mxu0 %v990_v8  ;;  %958 = vmatpush3.bf16.msra.mxu1 %v990_v8 }
  0x27   : > { %926 = vmatprep.subr.bf16.mxu0 %v991_v9  ;;  %951 = vmatprep.subr.bf16.mxu1 %v991_v9 }
  0x2a   : > { %927 = vmatpush3.bf16.msra.mxu0 %v991_v9  ;;  %959 = vmatpush3.bf16.msra.mxu1 %v991_v9 }
  0x2d   : > { %929 = vmatmul.mubr.bf16.vlgmr.msra.gmra.mxu0 %v994_v10  ;;  %937 = vmatmul.mubr.bf16.vlgmr.msra.gmra.mxu1 %v995_v11 }
  0x2e   : > { %932 = vmatprep.mubr.bf16.mxu0 %v996_v12  ;;  %940 = vmatprep.mubr.bf16.mxu1 %v998_v13 }
  0x35   : > { %933 = vmatmul.mubr.bf16.gmra.mxu0 %v997_v14  ;;  %941 = vmatmul.mubr.bf16.gmra.mxu1 %v999_v15 }
  0xed   : > { %v930_v17 = vpop.f32.mrf.mxu0  ;;  %v938_v18 = vpop.f32.mrf.mxu1 }
  0xee   : > { %v581_v19 = vadd.f32 %v930_v17, %v893_v16  ;;  %v589_v20 = vadd.f32 %v938_v18, %v893_v16 }
  0xef   : > { %v458_v21 = vpop.f32.mrf.mxu0  ;;  %v490_v22 = vpop.f32.mrf.mxu1 }
  0xf0   : > { %615 = vmax.xlane.f32.xlu0 %v589_v20  ;;  %599 = vmax.xlane.f32.xlu1 %v581_v19  ;;  %v579_v25 = vadd.f32 %v893_v16, %v458_v21  ;;  %v587_v30 = vadd.f32 %v893_v16, %v490_v22 }
  0xf1   : > { %v931_v23 = vpop.f32.mrf.mxu0  ;;  %v939_v24 = vpop.f32.mrf.mxu1 }
  0xf2   : > { %v582_v26 = vadd.f32 %v931_v23, %v893_v16  ;;  %v590_v31 = vadd.f32 %v939_v24, %v893_v16 }
  0xf3   : > { %v461_v27 = vpop.f32.mrf.mxu0  ;;  %v493_v28 = vpop.f32.mrf.mxu1 }
  0xf4   : > { %595 = vmax.xlane.f32.xlu0 %v579_v25  ;;  %601 = vmax.xlane.f32.xlu1 %v582_v26  ;;  %v580_v34 = vadd.f32 %v893_v16, %v461_v27  ;;  %v588_v35 = vadd.f32 %v893_v16, %v493_v28 }
  0xf5   : > { %v934_v29 = vpop.f32.mrf.mxu0  ;;  %v942_v33 = vpop.f32.mrf.mxu1 }
  0xf6   : > { %v585_v38 = vadd.f32 %v934_v29, %v893_v16  ;;  %v1181_v47 = vadd.f32 %v942_v33, %v893_v16 }
  0xf7   : > { %v474_v32 = vpop.f32.mrf.mxu0  ;;  %v506_v37 = vpop.f32.mrf.mxu1 }
  0xf8   : > { %611 = vmax.xlane.f32.xlu0 %v587_v30  ;;  %617 = vmax.xlane.f32.xlu1 %v590_v31  ;;  %v583_v42 = vadd.f32 %v893_v16, %v474_v32  ;;  %v1175_v45 = vadd.f32 %v893_v16, %v506_v37 }
  0xf9   : > { %v935_v36 = vpop.f32.mrf.mxu0  ;;  %v943_v41 = vpop.f32.mrf.mxu1 }
  0xfa   : > { %v1169_v39 = vadd.f32 %v935_v36, %v893_v16  ;;  %v1183_v48 = vadd.f32 %v943_v41, %v893_v16 }
  0xfb   : > { %v477_v40 = vpop.f32.mrf.mxu0  ;;  %v509_v44 = vpop.f32.mrf.mxu1 }
  0xfc   : > { %613 = vmax.xlane.f32.xlu1 %v588_v35  ;;  %597 = vmax.xlane.f32.xlu0 %v580_v34  ;;  %v1172_v43 = vadd.f32 %v893_v16, %v477_v40  ;;  %v1177_v46 = vadd.f32 %v893_v16, %v509_v44 }
 0x100   : > { %607 = vmax.xlane.f32.xlu0 %v585_v38  ;;  %609 = vmax.xlane.f32.xlu1 %v1169_v39 }
 0x104   : > { %603 = vmax.xlane.f32.xlu0 %v583_v42  ;;  %605 = vmax.xlane.f32.xlu1 %v1172_v43 }
 0x108   : > { %619 = vmax.xlane.f32.xlu0 %v1175_v45  ;;  %621 = vmax.xlane.f32.xlu1 %v1177_v46 }
 0x10c   : > { %623 = vmax.xlane.f32.xlu0 %v1181_v47  ;;  %625 = vmax.xlane.f32.xlu1 %v1183_v48 }
 0x179   : > { %v616_v49 = vpop.xlane.xlu0 %615  ;;  %v600_v50 = vpop.xlane.xlu1 %599 }
 0x17a   : > { %v637_v51 = vsub.f32 %v589_v20, %v616_v49  ;;  %v629_v52 = vsub.f32 %v581_v19, %v600_v50 }
 0x17c   : > { %v647_v53 = vmul.f32 1.442695, %v629_v52  ;;  %v663_v56 = vmul.f32 1.442695, %v637_v51 }
 0x17d   : > { %v596_v54 = vpop.xlane.xlu0 %595  ;;  %v602_v55 = vpop.xlane.xlu1 %601 }
 0x17e   : > { %v627_v57 = vsub.f32 %v579_v25, %v596_v54  ;;  %v630_v58 = vsub.f32 %v582_v26, %v602_v55  ;;  %1000 = vpow2.f32 %v647_v53 }
 0x17f   : > { %1002 = vpow2.f32 %v663_v56 }
 0x180   : > { %v649_v59 = vmul.f32 1.442695, %v630_v58  ;;  %v643_v62 = vmul.f32 1.442695, %v627_v57 }
 0x181   : > { %v612_v60 = vpop.xlane.xlu0 %611  ;;  %v618_v61 = vpop.xlane.xlu1 %617 }
 0x182   : > { %v635_v63 = vsub.f32 %v587_v30, %v612_v60  ;;  %v638_v0 = vsub.f32 %v590_v31, %v618_v61  ;;  %1004 = vpow2.f32 %v649_v59 }
 0x183   : > { %1006 = vpow2.f32 %v643_v62 }
 0x184   : > { %v665_v1 = vmul.f32 1.442695, %v638_v0  ;;  %v659_v4 = vmul.f32 1.442695, %v635_v63 }
 0x185   : > { %v614_v2 = vpop.xlane.xlu1 %613  ;;  %v598_v3 = vpop.xlane.xlu0 %597 }
 0x186   : > { %v628_v5 = vsub.f32 %v580_v34, %v598_v3  ;;  %1008 = vpow2.f32 %v665_v1  ;;  %v636_v6 = vsub.f32 %v588_v35, %v614_v2 }
 0x187   : > { %1010 = vpow2.f32 %v659_v4 }
 0x188   : > { %v645_v7 = vmul.f32 1.442695, %v628_v5  ;;  %v661_v11 = vmul.f32 1.442695, %v636_v6 }
 0x189   : > { %v608_v8 = vpop.xlane.xlu0 %607  ;;  %v610_v9 = vpop.xlane.xlu1 %609 }
 0x18a   : > { %v633_v10 = vsub.f32 %v585_v38, %v608_v8  ;;  %1012 = vpow2.f32 %v645_v7  ;;  %v634_v12 = vsub.f32 %v1169_v39, %v610_v9 }
 0x18b   : > { %v1188_v13 = vpop.eup %1000 }
 0x18c   : > { %v655_v14 = vmul.f32 1.442695, %v633_v10  ;;  %679 = vadd.xlane.f32.xlu0 %v1188_v13  ;;  %v1191_v18 = vpop.eup %1002  ;;  %v657_v19 = vmul.f32 1.442695, %v634_v12 }
 0x18d   : > { %v604_v15 = vpop.xlane.xlu0 %603  ;;  %v606_v16 = vpop.xlane.xlu1 %605 }
 0x18e   : > { %1014 = vpow2.f32 %v655_v14  ;;  %v631_v17 = vsub.f32 %v583_v42, %v604_v15  ;;  %v632_v20 = vsub.f32 %v1172_v43, %v606_v16 }
 0x18f   : > { %1016 = vpow2.f32 %v661_v11  ;;  %v1194_v21 = vpop.eup %1004 }
 0x190   : > { %v651_v22 = vmul.f32 1.442695, %v631_v17  ;;  %695 = vadd.xlane.f32.xlu0 %v1191_v18  ;;  %681 = vadd.xlane.f32.xlu1 %v1194_v21  ;;  %v1199_v26 = vpop.eup %1006  ;;  %v653_v27 = vmul.f32 1.442695, %v632_v20 }
 0x191   : > { %v620_v23 = vpop.xlane.xlu0 %619  ;;  %v622_v24 = vpop.xlane.xlu1 %621 }
 0x192   : > { %1018 = vpow2.f32 %v651_v22  ;;  %v639_v25 = vsub.f32 %v1175_v45, %v620_v23  ;;  %v640_v28 = vsub.f32 %v1177_v46, %v622_v24 }
 0x193   : > { %1020 = vpow2.f32 %v657_v19  ;;  %v1202_v29 = vpop.eup %1008 }
 0x194   : > { %v667_v30 = vmul.f32 1.442695, %v639_v25  ;;  %675 = vadd.xlane.f32.xlu0 %v1199_v26  ;;  %697 = vadd.xlane.f32.xlu1 %v1202_v29  ;;  %v1207_v34 = vpop.eup %1010  ;;  %v669_v35 = vmul.f32 1.442695, %v640_v28 }
 0x195   : > { %v624_v31 = vpop.xlane.xlu0 %623  ;;  %v626_v32 = vpop.xlane.xlu1 %625 }
 0x196   : > { %1022 = vpow2.f32 %v667_v30  ;;  %v641_v33 = vsub.f32 %v1181_v47, %v624_v31  ;;  %v642_v36 = vsub.f32 %v1183_v48, %v626_v32 }
 0x197   : > { %1024 = vpow2.f32 %v653_v27  ;;  %v1210_v37 = vpop.eup %1012 }
 0x198   : > { %v671_v38 = vmul.f32 1.442695, %v641_v33  ;;  %691 = vadd.xlane.f32.xlu0 %v1207_v34  ;;  %677 = vadd.xlane.f32.xlu1 %v1210_v37  ;;  %v673_v40 = vmul.f32 1.442695, %v642_v36 }
 0x19a   : > { %1026 = vpow2.f32 %v671_v38 }
 0x19b   : > { %v1214_v39 = vpop.eup %1014  ;;  %1028 = vpow2.f32 %v669_v35 }
 0x19c   : > { %v1216_v41 = vpop.eup %1016  ;;  %687 = vadd.xlane.f32.xlu0 %v1214_v39  ;;  %1030 = vpow2.f32 %v673_v40 }
 0x19d   : > { %693 = vadd.xlane.f32.xlu1 %v1216_v41 }
 0x19f   : > { %v1220_v42 = vpop.eup %1018 }
 0x1a0   : > { %v1222_v43 = vpop.eup %1020  ;;  %683 = vadd.xlane.f32.xlu0 %v1220_v42 }
 0x1a1   : > { %689 = vadd.xlane.f32.xlu1 %v1222_v43 }
 0x1a3   : > { %v1226_v44 = vpop.eup %1022 }
 0x1a4   : > { %v1228_v45 = vpop.eup %1024  ;;  %699 = vadd.xlane.f32.xlu0 %v1226_v44 }
 0x1a5   : > { %685 = vadd.xlane.f32.xlu1 %v1228_v45 }
 0x1a7   : > { %v1232_v46 = vpop.eup %1026 }
 0x1a8   : > { %v1234_v47 = vpop.eup %1028  ;;  %703 = vadd.xlane.f32.xlu0 %v1232_v46 }
 0x1a9   : > { %701 = vadd.xlane.f32.xlu1 %v1234_v47  ;;  %v1238_v48 = vpop.eup %1030 }
 0x1ad   : > { %705 = vadd.xlane.f32.xlu1 %v1238_v48 }
 0x215   : > { %v680_v49 = vpop.xlane.xlu0 %679 }
 0x216   : > { %1032 = vrcp.f32 %v680_v49 }
 0x219   : > { %v696_v50 = vpop.xlane.xlu0 %695  ;;  %v682_v51 = vpop.xlane.xlu1 %681 }
 0x21a   : > { %1034 = vrcp.f32 %v696_v50 }
 0x21b   : > { %1036 = vrcp.f32 %v682_v51 }
 0x21d   : > { %v676_v52 = vpop.xlane.xlu0 %675  ;;  %v698_v53 = vpop.xlane.xlu1 %697 }
 0x21e   : > { %1038 = vrcp.f32 %v676_v52 }
 0x21f   : > { %1040 = vrcp.f32 %v698_v53 }
 0x221   : > { %v692_v54 = vpop.xlane.xlu0 %691  ;;  %v678_v55 = vpop.xlane.xlu1 %677 }
 0x222   : > { %1042 = vrcp.f32 %v692_v54 }
 0x223   : > { %v1033_v56 = vpop.eup %1032  ;;  %1044 = vrcp.f32 %v678_v55 }
 0x224   : > { %v725_v57 = vmul.f32 %v1033_v56, %v1188_v13 }
 0x225   : > { %v688_v58 = vpop.xlane.xlu0 %687 }
 0x226   : > { %v694_v59 = vpop.xlane.xlu1 %693  ;;  %741 = vst [vmem:[%s1245_s19 + $0x10] sm:$0xff] %v725_v57  ;;  %1046 = vrcp.f32 %v688_v58 }
 0x227   : > { %v1035_v60 = vpop.eup %1034  ;;  %1048 = vrcp.f32 %v694_v59 }
 0x228   : > { %v1037_v61 = vpop.eup %1036  ;;  %v733_v62 = vmul.f32 %v1035_v60, %v1191_v18 }
 0x229   : > { %v726_v63 = vmul.f32 %v1037_v61, %v1194_v21  ;;  %v684_v0 = vpop.xlane.xlu0 %683 }
 0x22a   : > { %v690_v1 = vpop.xlane.xlu1 %689  ;;  %749 = vst [vmem:[%s1245_s19 + $0x50] sm:$0xff] %v733_v62  ;;  %1050 = vrcp.f32 %v684_v0 }
 0x22b   : > { %v1039_v2 = vpop.eup %1038  ;;  %742 = vst [vmem:[%s1245_s19 + $0x18] sm:$0xff] %v726_v63  ;;  %1052 = vrcp.f32 %v690_v1 }
 0x22c   : > { %v1041_v3 = vpop.eup %1040  ;;  %v723_v4 = vmul.f32 %v1039_v2, %v1199_v26 }
 0x22d   : > { %v734_v5 = vmul.f32 %v1041_v3, %v1202_v29  ;;  %v700_v6 = vpop.xlane.xlu0 %699 }
 0x22e   : > { %v686_v7 = vpop.xlane.xlu1 %685  ;;  %739 = vst [vmem:[%s1245_s19] sm:$0xff] %v723_v4  ;;  %1054 = vrcp.f32 %v700_v6 }
 0x22f   : > { %v1043_v8 = vpop.eup %1042  ;;  %750 = vst [vmem:[%s1245_s19 + $0x58] sm:$0xff] %v734_v5  ;;  %1056 = vrcp.f32 %v686_v7 }
 0x230   : > { %v1045_v9 = vpop.eup %1044  ;;  %v731_v10 = vmul.f32 %v1043_v8, %v1207_v34 }
 0x231   : > { %v724_v11 = vmul.f32 %v1045_v9, %v1210_v37  ;;  %v704_v12 = vpop.xlane.xlu0 %703 }
 0x232   : > { %v702_v13 = vpop.xlane.xlu1 %701  ;;  %747 = vst [vmem:[%s1245_s19 + $0x40] sm:$0xff] %v731_v10  ;;  %1058 = vrcp.f32 %v704_v12 }
 0x233   : > { %v1047_v14 = vpop.eup %1046  ;;  %740 = vst [vmem:[%s1245_s19 + $0x8] sm:$0xff] %v724_v11  ;;  %1060 = vrcp.f32 %v702_v13 }
 0x234   : > { %v1049_v15 = vpop.eup %1048  ;;  %v729_v16 = vmul.f32 %v1047_v14, %v1214_v39 }
 0x235   : > { %v732_v17 = vmul.f32 %v1049_v15, %v1216_v41 }
 0x236   : > { %v706_v18 = vpop.xlane.xlu1 %705  ;;  %745 = vst [vmem:[%s1245_s19 + $0x30] sm:$0xff] %v729_v16 }
 0x237   : > { %1062 = vrcp.f32 %v706_v18  ;;  %v1051_v19 = vpop.eup %1050  ;;  %748 = vst [vmem:[%s1245_s19 + $0x48] sm:$0xff] %v732_v17 }
 0x238   : > { %v1053_v20 = vpop.eup %1052  ;;  %v727_v21 = vmul.f32 %v1051_v19, %v1220_v42 }
 0x239   : > { %v730_v22 = vmul.f32 %v1053_v20, %v1222_v43 }
 0x23a   : > { %743 = vst [vmem:[%s1245_s19 + $0x20] sm:$0xff] %v727_v21 }
 0x23b   : > { %v1055_v23 = vpop.eup %1054  ;;  %746 = vst [vmem:[%s1245_s19 + $0x38] sm:$0xff] %v730_v22 }
 0x23c   : > { %v1057_v24 = vpop.eup %1056  ;;  %v735_v25 = vmul.f32 %v1055_v23, %v1226_v44 }
 0x23d   : > { %v728_v26 = vmul.f32 %v1057_v24, %v1228_v45 }
 0x23e   : > { %751 = vst [vmem:[%s1245_s19 + $0x60] sm:$0xff] %v735_v25 }
 0x23f   : > { %v1059_v27 = vpop.eup %1058  ;;  %744 = vst [vmem:[%s1245_s19 + $0x28] sm:$0xff] %v728_v26 }
 0x240   : > { %v1061_v28 = vpop.eup %1060  ;;  %v737_v29 = vmul.f32 %v1059_v27, %v1232_v46 }
 0x241   : > { %v736_v30 = vmul.f32 %v1061_v28, %v1234_v47 }
 0x242   : > { %753 = vst [vmem:[%s1245_s19 + $0x70] sm:$0xff] %v737_v29 }
 0x243   : > { %752 = vst [vmem:[%s1245_s19 + $0x68] sm:$0xff] %v736_v30 }
 0x244   : > { %v1063_v31 = vpop.eup %1062 }
 0x245   : > { %v738_v32 = vmul.f32 %v1063_v31, %v1238_v48 }
 0x247   : > { %754 = vst [vmem:[%s1245_s19 + $0x78] sm:$0xff] %v738_v32 }
 0x248 PF: > { %s13_s14 = sadd.s32 1, %s1086_s14   ;;  %s1292_s12 = smov %s1082_s13 }
 0x249   : > { %p10_p5 = scmp.ge.s32.totalorder %s13_s14, 4   ;;  %s1293_s13 = smov %s1295_s15 }
 0x24b   :  { %12 = sbr.rel (!%p10_p5) target bundleno = 2 (0x2), region = 76 }

</bundles_post_ra>
